<compile_context>
chip_gen: v6e
topology: v6e:2x2x1
jax: 0.10.0
libtpu: 0.0.40
codegen_flags: <defaults>
</compile_context>

<pallas_src>
import jax
import jax.numpy as jnp
from jax.experimental import pallas as pl
from jax.experimental.pallas import tpu as pltpu


def basic_block_kernel(x_ref, b1_ref, b2_ref, sb_ref, o_ref):
    FB, H, Li = x_ref.shape
    Lo = o_ref.shape[-1]
    M = FB * H

    # Per-frame H-boundary masks.  Frames are packed along lanes and stacked
    # along the flattened (FB*H) sublane axis, so row r belongs to h = r % H.
    row = jax.lax.broadcasted_iota(jnp.int32, (M, 1), 0)
    not_top = (row % H) != 0          # row h-1 exists inside the frame
    not_bot = (row % H) != (H - 1)    # row h+1 exists inside the frame

    def conv_band(xm, b_ref):
        # 3x3 conv = 3 banded matmuls (W taps + zero W-padding folded into the
        # block-diagonal weights); the +-1 H shifts are sublane rolls (XLU)
        # with the wrapped / cross-frame rows masked to zero.
        z0 = jnp.dot(xm, b_ref[0], preferred_element_type=jnp.float32)
        z1 = jnp.dot(xm, b_ref[1], preferred_element_type=jnp.float32)
        z2 = jnp.dot(xm, b_ref[2], preferred_element_type=jnp.float32)
        dn = jnp.where(not_top, pltpu.roll(z0, shift=1, axis=0), 0.0)
        up = jnp.where(not_bot, pltpu.roll(z2, shift=M - 1, axis=0), 0.0)
        return z1 + dn + up

    xm = x_ref[...].astype(jnp.float32).reshape(M, Li)

    # conv1 -> bn1 (folded scale/bias, lane-tiled) -> relu
    y = conv_band(xm, b1_ref)
    y = jnp.maximum(y * sb_ref[0:1, :] + sb_ref[1:2, :], 0.0)

    # conv2 -> bn2
    out = conv_band(y, b2_ref)
    out = out * sb_ref[2:3, :] + sb_ref[3:4, :]

    # Identity residual: re-read x here so the input is not live across conv2.
    out = out + x_ref[...].astype(jnp.float32).reshape(M, Lo)
    o_ref[...] = jnp.maximum(out, 0.0).reshape(FB, H, Lo).astype(o_ref.dtype)


def _fold_bn(gamma, beta, mean, var, eps=1e-5):
    scale = gamma / jnp.sqrt(var + eps)
    bias = beta - mean * scale
    return jnp.stack([scale, bias], axis=0)          # (2, C)


def _band_weights(w, W):
    """w: (3, 3, Cin, Cout) HWIO -> (3, W*Cin, W*Cout) banded matrices.

    B[i][(wcol+j-1)*Cin + c, wcol*Cout + o] = w[i, j, c, o]; taps falling
    outside [0, W) are dropped, which realizes the zero W-padding.
    """
    KH, KW, Cin, Cout = w.shape
    B = jnp.zeros((KH, W * Cin, W * Cout), w.dtype)
    for wcol in range(W):
        for j in range(KW):
            src = wcol + j - 1
            if 0 <= src < W:
                B = B.at[:, src * Cin:(src + 1) * Cin,
                         wcol * Cout:(wcol + 1) * Cout].set(w[:, j])
    return B


def _pack_block_diag(B, P):
    """(3, Ki, Ko) -> (3, P*Ki, P*Ko): P copies of B on the block diagonal."""
    if P == 1:
        return B
    KH, Ki, Ko = B.shape
    out = jnp.zeros((KH, P * Ki, P * Ko), B.dtype)
    for p in range(P):
        out = out.at[:, p * Ki:(p + 1) * Ki, p * Ko:(p + 1) * Ko].set(B)
    return out


def _target_lanes():
    """256 lanes fills the 256-wide MXU on v6e/v7x; 128 matches v5e's MXU and
    still gives unmasked full-vreg stores everywhere (safe fallback)."""
    try:
        kind = jax.devices()[0].device_kind.lower()
    except Exception:
        return 128
    return 256 if ("v6" in kind or "v7" in kind) else 128


def basic_block_forward(x_ncdhw, w1, w2, bn1, bn2, eps=1e-5, fb_cap=64,
                        lanes=None):
    """x_ncdhw: (N, C, D, H, W); w1: (3,3,Cin,Cout) HWIO; w2: (3,3,Cout,Cout)."""
    N, C, D, H, W = x_ncdhw.shape
    Cin, Cout = C, w1.shape[-1]
    # Identity residual path (default BasicBlock: stride=1, downsample=None).
    assert Cin == Cout, "identity residual requires inplanes == planes"
    F = N * D
    WCi, WCo = W * Cin, W * Cout

    if lanes is None:
        lanes = _target_lanes()
    P = lanes // WCi if (WCi <= lanes and lanes % WCi == 0) else 1
    Li, Lo = P * WCi, P * WCo

    # NCDHW -> (F, H, W*C) channels-last frames.
    x = jnp.transpose(x_ncdhw, (0, 2, 3, 4, 1)).reshape(F, H, WCi)

    # Pack P frames per lane row -> (G, H, P*W*C); last dim is 128/256.
    Fp = ((F + P - 1) // P) * P
    if Fp != F:
        x = jnp.pad(x, ((0, Fp - F), (0, 0), (0, 0)))
    G = Fp // P
    x = x.reshape(G, P, H, WCi).transpose(0, 2, 1, 3).reshape(G, H, Li)

    # Frame-group blocking.  fb_cap keeps the per-step block + in-kernel
    # intermediates comfortably inside the default scoped VMEM on all of
    # v5e/v6e/v7x (raise it for big workloads, halving on v7x's 64 MiB VMEM).
    fb = max(1, min(fb_cap, G))
    # Keep the grid even (>=2 steps) when there is more than one step so the
    # two v7x TensorCores split the "parallel" axis evenly.
    step = fb if G <= fb else 2 * fb
    Gp = ((G + step - 1) // step) * step
    if Gp != G:
        x = jnp.pad(x, ((0, Gp - G), (0, 0), (0, 0)))

    # Block-diagonal banded weights and folded BN scale/bias (both layers in
    # one lane-tiled (4, Lo) array -> single per-step DMA).
    B1 = _pack_block_diag(_band_weights(w1, W), P)            # (3, Li, Lo)
    B2 = _pack_block_diag(_band_weights(w2, W), P)            # (3, Lo, Lo)
    sb = jnp.concatenate([_fold_bn(*bn1, eps=eps),
                          _fold_bn(*bn2, eps=eps)], axis=0)   # (4, Cout)
    sb = jnp.tile(sb, (1, P * W))                              # (4, Lo)

    m_total = Gp * H
    flops = int(2 * 3 * m_total * (Li * Lo + Lo * Lo))        # banded matmuls
    bytes_accessed = int(4 * (m_total * (Li + Lo)
                              + B1.size + B2.size + sb.size))

    out = pl.pallas_call(
        basic_block_kernel,
        out_shape=jax.ShapeDtypeStruct((Gp, H, Lo), x.dtype),
        grid_spec=pltpu.PrefetchScalarGridSpec(
            num_scalar_prefetch=0,
            grid=(Gp // fb,),
            in_specs=[
                pl.BlockSpec((fb, H, Li), lambda g: (g, 0, 0)),
                pl.BlockSpec((3, Li, Lo), lambda g: (0, 0, 0)),
                pl.BlockSpec((3, Lo, Lo), lambda g: (0, 0, 0)),
                pl.BlockSpec((4, Lo), lambda g: (0, 0)),
            ],
            out_specs=pl.BlockSpec((fb, H, Lo), lambda g: (g, 0, 0)),
        ),
        compiler_params=pltpu.CompilerParams(
            dimension_semantics=("parallel",)),
        cost_estimate=pl.CostEstimate(
            flops=flops, transcendentals=0, bytes_accessed=bytes_accessed),
    )(x, B1, B2, sb)

    # Unpack: (Gp, H, P*WCo) -> NCDHW.
    out = out[:G].reshape(G, H, P, WCo).transpose(0, 2, 1, 3).reshape(Fp, H, WCo)
    out = out[:F].reshape(N, D, H, W, Cout)
    return jnp.transpose(out, (0, 4, 1, 2, 3))


def basic_block_reference(x_ncdhw, w1, w2, bn1, bn2, eps=1e-5):
    N, C, D, H, W = x_ncdhw.shape
    Cout = w2.shape[-1]
    x = jnp.transpose(x_ncdhw, (0, 2, 3, 4, 1)).reshape(N * D, H, W, C)

    def conv(a, w):
        return jax.lax.conv_general_dilated(
            a, w, window_strides=(1, 1), padding="SAME",
            dimension_numbers=("NHWC", "HWIO", "NHWC"))

    def bn(a, p):
        gamma, beta, mean, var = p
        return (a - mean) / jnp.sqrt(var + eps) * gamma + beta

    out = jax.nn.relu(bn(conv(x, w1), bn1))
    out = bn(conv(out, w2), bn2) + x
    out = jax.nn.relu(out)
    return jnp.transpose(out.reshape(N, D, H, W, Cout), (0, 4, 1, 2, 3))


if __name__ == "__main__":
    # Small shapes: batch=2, inplanes=planes=4, depth=8, spatial=16
    N, C, D, H, W = 2, 4, 8, 16, 16
    Cout = C  # expansion = 1, stride = 1, downsample = None

    key = jax.random.PRNGKey(0)
    k_x, k_w1, k_w2 = jax.random.split(key, 3)

    x = jax.random.normal(k_x, (N, C, D, H, W), dtype=jnp.float32)
    # conv weights: PyTorch (out, in, 1, 3, 3) stored here as HWIO (3, 3, in, out)
    w1 = jax.random.normal(k_w1, (3, 3, C, Cout), dtype=jnp.float32) / jnp.sqrt(C * 9.0)
    w2 = jax.random.normal(k_w2, (3, 3, Cout, Cout), dtype=jnp.float32) / jnp.sqrt(Cout * 9.0)

    # Deterministic BatchNorm parameters (gamma, beta, running_mean, running_var)
    bn1 = (1.0 + 0.10 * jnp.arange(Cout, dtype=jnp.float32),
           0.05 * jnp.arange(Cout, dtype=jnp.float32),
           0.01 * jnp.arange(Cout, dtype=jnp.float32),
           1.0 + 0.02 * jnp.arange(Cout, dtype=jnp.float32))
    bn2 = (1.0 - 0.05 * jnp.arange(Cout, dtype=jnp.float32),
           -0.03 * jnp.arange(Cout, dtype=jnp.float32),
           0.02 * jnp.arange(Cout, dtype=jnp.float32),
           1.0 + 0.01 * jnp.arange(Cout, dtype=jnp.float32))

    out = jax.block_until_ready(basic_block_forward(x, w1, w2, bn1, bn2))
    ref = jax.block_until_ready(basic_block_reference(x, w1, w2, bn1, bn2))

    assert out.shape == (N, Cout, D, H, W), out.shape
    max_err = float(jnp.max(jnp.abs(out - ref)))
    assert jnp.allclose(out, ref, rtol=1e-4, atol=1e-4), max_err

    print("KERNEL_OK")
</pallas_src>

<mosaic_0001>
module attributes {stable_mosaic.version = 11 : i64} {
  func.func @basic_block_kernel(%arg0: i32, %arg1: memref<8x16x128xf32, #tpu.memory_space<vmem>>, %arg2: memref<3x128x128xf32, #tpu.memory_space<vmem>>, %arg3: memref<3x128x128xf32, #tpu.memory_space<vmem>>, %arg4: memref<4x128xf32, #tpu.memory_space<vmem>>, %arg5: memref<8x16x128xf32, #tpu.memory_space<vmem>>) attributes {dimension_semantics = [#tpu.dimension_semantics<parallel>], iteration_bounds = array<i64: 1>, scalar_prefetch = 0 : i64, scratch_operands = 0 : i64, tpu.core_type = #tpu.core_type<tc>, window_params = [{transform_indices = @transform_0, window_bounds = array<i64: 8, 16, 128>}, {pipeline_mode = #tpu.pipeline_mode<synchronous>, transform_indices = @transform_1, window_bounds = array<i64: 3, 128, 128>}, {pipeline_mode = #tpu.pipeline_mode<synchronous>, transform_indices = @transform_2, window_bounds = array<i64: 3, 128, 128>}, {pipeline_mode = #tpu.pipeline_mode<synchronous>, transform_indices = @transform_3, window_bounds = array<i64: 4, 128>}, {transform_indices = @transform_4, window_bounds = array<i64: 8, 16, 128>}]} {
    %0 = tpu.iota {dimensions = array<i32: 0>} : vector<128x1xi32>
    %c16_i32 = arith.constant 16 : i32
    %c0_i32 = arith.constant 0 : i32
    %1 = arith.cmpi eq, %c16_i32, %c0_i32 : i32
    %c1_i32 = arith.constant 1 : i32
    %2 = arith.select %1, %c1_i32, %c16_i32 : i32
    %3 = vector.broadcast %2 : i32 to vector<128x1xi32>
    %4 = arith.remsi %0, %3 : vector<128x1xi32>
    %c0_i32_0 = arith.constant 0 : i32
    %5 = vector.broadcast %c0_i32_0 : i32 to vector<128x1xi32>
    %6 = arith.cmpi ne, %4, %5 : vector<128x1xi32>
    %c0_i32_1 = arith.constant 0 : i32
    %7 = vector.broadcast %c0_i32_1 : i32 to vector<128x1xi32>
    %8 = arith.cmpi slt, %4, %7 : vector<128x1xi32>
    %c0_i32_2 = arith.constant 0 : i32
    %9 = arith.cmpi slt, %2, %c0_i32_2 : i32
    %10 = vector.broadcast %9 : i1 to vector<128x1xi1>
    %11 = vector.broadcast %10 : vector<128x1xi1> to vector<128x1xi1>
    %12 = arith.xori %8, %11 : vector<128x1xi1>
    %13 = arith.andi %12, %6 : vector<128x1xi1>
    %14 = vector.broadcast %2 : i32 to vector<128x1xi32>
    %15 = arith.addi %4, %14 : vector<128x1xi32>
    %16 = arith.select %13, %15, %4 : vector<128x1xi1>, vector<128x1xi32>
    %c0_i32_3 = arith.constant 0 : i32
    %17 = vector.broadcast %c0_i32_3 : i32 to vector<128x1xi32>
    %18 = arith.cmpi ne, %16, %17 : vector<128x1xi32>
    %c16_i32_4 = arith.constant 16 : i32
    %c0_i32_5 = arith.constant 0 : i32
    %19 = arith.cmpi eq, %c16_i32_4, %c0_i32_5 : i32
    %c1_i32_6 = arith.constant 1 : i32
    %20 = arith.select %19, %c1_i32_6, %c16_i32_4 : i32
    %21 = vector.broadcast %20 : i32 to vector<128x1xi32>
    %22 = arith.remsi %0, %21 : vector<128x1xi32>
    %c0_i32_7 = arith.constant 0 : i32
    %23 = vector.broadcast %c0_i32_7 : i32 to vector<128x1xi32>
    %24 = arith.cmpi ne, %22, %23 : vector<128x1xi32>
    %c0_i32_8 = arith.constant 0 : i32
    %25 = vector.broadcast %c0_i32_8 : i32 to vector<128x1xi32>
    %26 = arith.cmpi slt, %22, %25 : vector<128x1xi32>
    %c0_i32_9 = arith.constant 0 : i32
    %27 = arith.cmpi slt, %20, %c0_i32_9 : i32
    %28 = vector.broadcast %27 : i1 to vector<128x1xi1>
    %29 = vector.broadcast %28 : vector<128x1xi1> to vector<128x1xi1>
    %30 = arith.xori %26, %29 : vector<128x1xi1>
    %31 = arith.andi %30, %24 : vector<128x1xi1>
    %32 = vector.broadcast %20 : i32 to vector<128x1xi32>
    %33 = arith.addi %22, %32 : vector<128x1xi32>
    %34 = arith.select %31, %33, %22 : vector<128x1xi1>, vector<128x1xi32>
    %c15_i32 = arith.constant 15 : i32
    %35 = vector.broadcast %c15_i32 : i32 to vector<128x1xi32>
    %36 = arith.cmpi ne, %34, %35 : vector<128x1xi32>
    %c0 = arith.constant 0 : index
    %c0_10 = arith.constant 0 : index
    %c0_11 = arith.constant 0 : index
    %37 = vector.load %arg1[%c0, %c0_10, %c0_11] : memref<8x16x128xf32, #tpu.memory_space<vmem>>, vector<8x16x128xf32>
    %38 = vector.shape_cast %37 : vector<8x16x128xf32> to vector<128x128xf32>
    %c0_12 = arith.constant 0 : index
    %c0_13 = arith.constant 0 : index
    %c0_14 = arith.constant 0 : index
    %39 = vector.load %arg2[%c0_12, %c0_13, %c0_14] : memref<3x128x128xf32, #tpu.memory_space<vmem>>, vector<1x128x128xf32>
    %40 = vector.shape_cast %39 : vector<1x128x128xf32> to vector<128x128xf32>
    %cst = arith.constant dense<0.000000e+00> : vector<128x128xf32>
    %41 = tpu.matmul %38, %40, %cst {dimension_numbers = #tpu.dot_dimension_numbers<[1], [0], [0], [1], [0, 0, 1, 1], [], []>} : vector<128x128xf32>, vector<128x128xf32>, vector<128x128xf32> -> vector<128x128xf32>
    %c1 = arith.constant 1 : index
    %c0_15 = arith.constant 0 : index
    %c0_16 = arith.constant 0 : index
    %42 = vector.load %arg2[%c1, %c0_15, %c0_16] : memref<3x128x128xf32, #tpu.memory_space<vmem>>, vector<1x128x128xf32>
    %43 = vector.shape_cast %42 : vector<1x128x128xf32> to vector<128x128xf32>
    %cst_17 = arith.constant dense<0.000000e+00> : vector<128x128xf32>
    %44 = tpu.matmul %38, %43, %cst_17 {dimension_numbers = #tpu.dot_dimension_numbers<[1], [0], [0], [1], [0, 0, 1, 1], [], []>} : vector<128x128xf32>, vector<128x128xf32>, vector<128x128xf32> -> vector<128x128xf32>
    %c2 = arith.constant 2 : index
    %c0_18 = arith.constant 0 : index
    %c0_19 = arith.constant 0 : index
    %45 = vector.load %arg2[%c2, %c0_18, %c0_19] : memref<3x128x128xf32, #tpu.memory_space<vmem>>, vector<1x128x128xf32>
    %46 = vector.shape_cast %45 : vector<1x128x128xf32> to vector<128x128xf32>
    %cst_20 = arith.constant dense<0.000000e+00> : vector<128x128xf32>
    %47 = tpu.matmul %38, %46, %cst_20 {dimension_numbers = #tpu.dot_dimension_numbers<[1], [0], [0], [1], [0, 0, 1, 1], [], []>} : vector<128x128xf32>, vector<128x128xf32>, vector<128x128xf32> -> vector<128x128xf32>
    %c1_i32_21 = arith.constant 1 : i32
    %48 = tpu.dynamic_rotate %41 by %c1_i32_21 dim 0 : vector<128x128xf32>, i32 -> vector<128x128xf32>
    %cst_22 = arith.constant 0.000000e+00 : f32
    %49 = vector.shape_cast %18 : vector<128x1xi1> to vector<128x1xi1>
    %50 = vector.broadcast %49 : vector<128x1xi1> to vector<128x128xi1>
    %51 = vector.broadcast %cst_22 : f32 to vector<128x128xf32>
    %52 = arith.select %50, %48, %51 : vector<128x128xi1>, vector<128x128xf32>
    %c127_i32 = arith.constant 127 : i32
    %53 = tpu.dynamic_rotate %47 by %c127_i32 dim 0 : vector<128x128xf32>, i32 -> vector<128x128xf32>
    %cst_23 = arith.constant 0.000000e+00 : f32
    %54 = vector.shape_cast %36 : vector<128x1xi1> to vector<128x1xi1>
    %55 = vector.broadcast %54 : vector<128x1xi1> to vector<128x128xi1>
    %56 = vector.broadcast %cst_23 : f32 to vector<128x128xf32>
    %57 = arith.select %55, %53, %56 : vector<128x128xi1>, vector<128x128xf32>
    %58 = arith.addf %44, %52 : vector<128x128xf32>
    %59 = arith.addf %58, %57 : vector<128x128xf32>
    %c0_24 = arith.constant 0 : index
    %c0_25 = arith.constant 0 : index
    %60 = vector.load %arg4[%c0_24, %c0_25] : memref<4x128xf32, #tpu.memory_space<vmem>>, vector<1x128xf32>
    %61 = vector.broadcast %60 : vector<1x128xf32> to vector<128x128xf32>
    %62 = arith.mulf %59, %61 : vector<128x128xf32>
    %c1_26 = arith.constant 1 : index
    %c0_27 = arith.constant 0 : index
    %63 = vector.load %arg4[%c1_26, %c0_27] : memref<4x128xf32, #tpu.memory_space<vmem>>, vector<1x128xf32>
    %64 = vector.broadcast %63 : vector<1x128xf32> to vector<128x128xf32>
    %65 = arith.addf %62, %64 : vector<128x128xf32>
    %cst_28 = arith.constant 0.000000e+00 : f32
    %66 = vector.broadcast %cst_28 : f32 to vector<128x128xf32>
    %67 = arith.maximumf %65, %66 : vector<128x128xf32>
    %c0_29 = arith.constant 0 : index
    %c0_30 = arith.constant 0 : index
    %c0_31 = arith.constant 0 : index
    %68 = vector.load %arg3[%c0_29, %c0_30, %c0_31] : memref<3x128x128xf32, #tpu.memory_space<vmem>>, vector<1x128x128xf32>
    %69 = vector.shape_cast %68 : vector<1x128x128xf32> to vector<128x128xf32>
    %cst_32 = arith.constant dense<0.000000e+00> : vector<128x128xf32>
    %70 = tpu.matmul %67, %69, %cst_32 {dimension_numbers = #tpu.dot_dimension_numbers<[1], [0], [0], [1], [0, 0, 1, 1], [], []>} : vector<128x128xf32>, vector<128x128xf32>, vector<128x128xf32> -> vector<128x128xf32>
    %c1_33 = arith.constant 1 : index
    %c0_34 = arith.constant 0 : index
    %c0_35 = arith.constant 0 : index
    %71 = vector.load %arg3[%c1_33, %c0_34, %c0_35] : memref<3x128x128xf32, #tpu.memory_space<vmem>>, vector<1x128x128xf32>
    %72 = vector.shape_cast %71 : vector<1x128x128xf32> to vector<128x128xf32>
    %cst_36 = arith.constant dense<0.000000e+00> : vector<128x128xf32>
    %73 = tpu.matmul %67, %72, %cst_36 {dimension_numbers = #tpu.dot_dimension_numbers<[1], [0], [0], [1], [0, 0, 1, 1], [], []>} : vector<128x128xf32>, vector<128x128xf32>, vector<128x128xf32> -> vector<128x128xf32>
    %c2_37 = arith.constant 2 : index
    %c0_38 = arith.constant 0 : index
    %c0_39 = arith.constant 0 : index
    %74 = vector.load %arg3[%c2_37, %c0_38, %c0_39] : memref<3x128x128xf32, #tpu.memory_space<vmem>>, vector<1x128x128xf32>
    %75 = vector.shape_cast %74 : vector<1x128x128xf32> to vector<128x128xf32>
    %cst_40 = arith.constant dense<0.000000e+00> : vector<128x128xf32>
    %76 = tpu.matmul %67, %75, %cst_40 {dimension_numbers = #tpu.dot_dimension_numbers<[1], [0], [0], [1], [0, 0, 1, 1], [], []>} : vector<128x128xf32>, vector<128x128xf32>, vector<128x128xf32> -> vector<128x128xf32>
    %c1_i32_41 = arith.constant 1 : i32
    %77 = tpu.dynamic_rotate %70 by %c1_i32_41 dim 0 : vector<128x128xf32>, i32 -> vector<128x128xf32>
    %cst_42 = arith.constant 0.000000e+00 : f32
    %78 = vector.shape_cast %18 : vector<128x1xi1> to vector<128x1xi1>
    %79 = vector.broadcast %78 : vector<128x1xi1> to vector<128x128xi1>
    %80 = vector.broadcast %cst_42 : f32 to vector<128x128xf32>
    %81 = arith.select %79, %77, %80 : vector<128x128xi1>, vector<128x128xf32>
    %c127_i32_43 = arith.constant 127 : i32
    %82 = tpu.dynamic_rotate %76 by %c127_i32_43 dim 0 : vector<128x128xf32>, i32 -> vector<128x128xf32>
    %cst_44 = arith.constant 0.000000e+00 : f32
    %83 = vector.shape_cast %36 : vector<128x1xi1> to vector<128x1xi1>
    %84 = vector.broadcast %83 : vector<128x1xi1> to vector<128x128xi1>
    %85 = vector.broadcast %cst_44 : f32 to vector<128x128xf32>
    %86 = arith.select %84, %82, %85 : vector<128x128xi1>, vector<128x128xf32>
    %87 = arith.addf %73, %81 : vector<128x128xf32>
    %88 = arith.addf %87, %86 : vector<128x128xf32>
    %c2_45 = arith.constant 2 : index
    %c0_46 = arith.constant 0 : index
    %89 = vector.load %arg4[%c2_45, %c0_46] : memref<4x128xf32, #tpu.memory_space<vmem>>, vector<1x128xf32>
    %90 = vector.broadcast %89 : vector<1x128xf32> to vector<128x128xf32>
    %91 = arith.mulf %88, %90 : vector<128x128xf32>
    %c3 = arith.constant 3 : index
    %c0_47 = arith.constant 0 : index
    %92 = vector.load %arg4[%c3, %c0_47] : memref<4x128xf32, #tpu.memory_space<vmem>>, vector<1x128xf32>
    %93 = vector.broadcast %92 : vector<1x128xf32> to vector<128x128xf32>
    %94 = arith.addf %91, %93 : vector<128x128xf32>
    %c0_48 = arith.constant 0 : index
    %c0_49 = arith.constant 0 : index
    %c0_50 = arith.constant 0 : index
    %95 = vector.load %arg1[%c0_48, %c0_49, %c0_50] : memref<8x16x128xf32, #tpu.memory_space<vmem>>, vector<8x16x128xf32>
    %96 = vector.shape_cast %95 : vector<8x16x128xf32> to vector<128x128xf32>
    %97 = arith.addf %94, %96 : vector<128x128xf32>
    %cst_51 = arith.constant 0.000000e+00 : f32
    %98 = vector.broadcast %cst_51 : f32 to vector<128x128xf32>
    %99 = arith.maximumf %97, %98 : vector<128x128xf32>
    %100 = vector.shape_cast %99 : vector<128x128xf32> to vector<8x16x128xf32>
    %c0_52 = arith.constant 0 : index
    %c0_53 = arith.constant 0 : index
    %c0_54 = arith.constant 0 : index
    %101 = vector.load %arg5[%c0_52, %c0_53, %c0_54] : memref<8x16x128xf32, #tpu.memory_space<vmem>>, vector<8x16x128xf32>
    tpu.vector_store %arg5[%c0_52, %c0_53, %c0_54], %100 {strides = array<i32>} : memref<8x16x128xf32, #tpu.memory_space<vmem>>, vector<8x16x128xf32>,
    return
  }
  func.func @transform_0(%arg0: i32) -> (i32, i32, i32) {
    %c0_i32 = arith.constant 0 : i32
    %c0_i32_0 = arith.constant 0 : i32
    %c0_i32_1 = arith.constant 0 : i32
    return %arg0, %c0_i32, %c0_i32_0 : i32, i32, i32
  }
  func.func @transform_1(%arg0: i32) -> (i32, i32, i32) {
    %c0_i32 = arith.constant 0 : i32
    %c0_i32_0 = arith.constant 0 : i32
    %c0_i32_1 = arith.constant 0 : i32
    %c0_i32_2 = arith.constant 0 : i32
    return %c0_i32, %c0_i32_0, %c0_i32_1 : i32, i32, i32
  }
  func.func @transform_2(%arg0: i32) -> (i32, i32, i32) {
    %c0_i32 = arith.constant 0 : i32
    %c0_i32_0 = arith.constant 0 : i32
    %c0_i32_1 = arith.constant 0 : i32
    %c0_i32_2 = arith.constant 0 : i32
    return %c0_i32, %c0_i32_0, %c0_i32_1 : i32, i32, i32
  }
  func.func @transform_3(%arg0: i32) -> (i32, i32) {
    %c0_i32 = arith.constant 0 : i32
    %c0_i32_0 = arith.constant 0 : i32
    %c0_i32_1 = arith.constant 0 : i32
    return %c0_i32, %c0_i32_0 : i32, i32
  }
  func.func @transform_4(%arg0: i32) -> (i32, i32, i32) {
    %c0_i32 = arith.constant 0 : i32
    %c0_i32_0 = arith.constant 0 : i32
    %c0_i32_1 = arith.constant 0 : i32
    return %arg0, %c0_i32, %c0_i32_0 : i32, i32, i32
  }
}

</mosaic_0001>

<bundles_post_ra>
// kernel: tpu_custom_call.1
= control target key start
LH: loop header
LB: loop body
LE: loop exit
PB: predicated region body
PF: predicated region fallthrough
CT: control target
= control target key end

     0   :  { %9 = vsyncpa [#allocation3], 0  ;;  %s3199_s0 = inlined_call_operand.hbm [shape: f32[8,16,128], index: 0, kind: input, shape index: {}]   ;;  %s3200_s1 = inlined_call_operand.hbm [shape: f32[3,128,128], index: 1, kind: input, shape index: {}]   ;;  %s3201_s2 = inlined_call_operand.hbm [shape: f32[3,128,128], index: 2, kind: input, shape index: {}]   ;;  %s3202_s3 = inlined_call_operand.vmem [shape: f32[4,128], index: 3, kind: input, shape index: {}]   ;;  %s3203_s4 = inlined_call_operand.hbm [shape: f32[8,16,128], index: 4, kind: output, shape index: {}]  }
   0x1   :  { %10 = vsyncpa [#allocation6], 0 }
   0x2   :  { %11 = vsyncpa [#allocation4], 0  ;;  %s2382_s15 = smov [#allocation5]   ;;  %s2383_s17 = smov [#allocation2]  }
   0x3   :  { %s29_s16 = sshll.u32 %s2382_s15, 4  ;;  %s17_s18 = sshll.u32 %s2383_s17, 4  ;;  %s30_s16 = int_to_ptr.vmem [resolvable:$true] %s29_s16  ;;  %s18_s18 = int_to_ptr.vmem [resolvable:$true] %s17_s18 }
   0x4   :  { %s2304_s19 = scalar_lea.vmem %s30_s16, 6144  ;;  %p2309_p1 = scmp.lt.s32.totalorder %s30_s16, %s30_s16 }
   0x5   :  { %p2305_p0 = scmp.ne.s32.totalorder %s30_s16, %s2304_s19  ;;  %p2310_p2 = scmp.lt.s32.totalorder %s2304_s19, %s2304_s19 }
   0x7   :  { %p2311_p3 = por %p2310_p2, %p2309_p1 }
   0x9   :  { %p2312_p4 = pnand %p2311_p3, %p2305_p0 }
   0xb   :  { %2315 = shalt.err (!%p2312_p4)
}
   0xc   :  { %s2384_s20 = smov 128   ;;  %s2385_s21 = smov 8  }
   0xd   :  { %35 = dma.hbm_to_vmem [thread:$0]  %s3200_s1, 6144, %s30_s16, [#allocation6], %s2384_s20, %s2384_s20, %s2385_s21  }
   0xe   :  { %s2324_s24 = scalar_lea.vmem %s18_s18, 2048  ;;  %p2329_p6 = scmp.lt.s32.totalorder %s18_s18, %s18_s18 }
   0xf   :  { %p2325_p5 = scmp.ne.s32.totalorder %s18_s18, %s2324_s24  ;;  %p2330_p7 = scmp.lt.s32.totalorder %s2324_s24, %s2324_s24 }
  0x11   :  { %p2331_p8 = por %p2330_p7, %p2329_p6 }
  0x13   :  { %p2332_p9 = pnand %p2331_p8, %p2325_p5 }
  0x15   :  { %2335 = shalt.err (!%p2332_p9)
}
  0x16   :  { %23 = dma.hbm_to_vmem [thread:$0]  %s3199_s0, 2048, %s18_s18, [#allocation3], %s2384_s20, %s2384_s20, %s2385_s21  }
  0x17   :  { %s2386_s27 = smov [#allocation7]  }
  0x18   :  { %s41_s28 = sshll.u32 %s2386_s27, 4  ;;  %s42_s28 = int_to_ptr.vmem [resolvable:$true] %s41_s28 }
  0x19   :  { %s2344_s29 = scalar_lea.vmem %s42_s28, 6144  ;;  %p2349_p11 = scmp.lt.s32.totalorder %s42_s28, %s42_s28 }
  0x1a   :  { %p2345_p10 = scmp.ne.s32.totalorder %s42_s28, %s2344_s29  ;;  %p2350_p12 = scmp.lt.s32.totalorder %s2344_s29, %s2344_s29 }
  0x1c   :  { %p2351_p13 = por %p2350_p12, %p2349_p11 }
  0x1e   :  { %p2352_p0 = pnand %p2351_p13, %p2345_p10 }
  0x20   :  { %2355 = shalt.err (!%p2352_p0)
}
  0x21   :  { %47 = dma.hbm_to_vmem [thread:$0]  %s3201_s2, 6144, %s42_s28, [#allocation6], %s2384_s20, %s2384_s20, %s2385_s21  }
  0x22   :  { %2376 = dma.done.wait [#allocation3], 2048  }
  0x23   :  { %2377 = vsyncadd [#allocation3], 4294965248 }
  0x24   :  { %2378 = dma.done.wait [#allocation6], 12288  }
  0x25   :  { %2379 = vsyncadd [#allocation6], 4294955008  ;;  %v331_v0 = vld [vmem:[#allocation5 + $0x78] sm:$0xff]  ;;  %v330_v2 = vld [vmem:[#allocation5 + $0x70] sm:$0xff] }
  0x26   :  { %v510_v1 = vld [vmem:[#allocation5 + $0x178] sm:$0xff]  ;;  %1938 = vmatprep.subr.mxu0 %v331_v0  ;;  %v509_v3 = vld [vmem:[#allocation5 + $0x170] sm:$0xff]  ;;  %v329_v4 = vld [vmem:[#allocation5 + $0x68] sm:$0xff] }
  0x27   :  { %1994 = vmatprep.subr.mxu1 %v510_v1  ;;  %1939 = vmatpush3.msra.mxu0 %v331_v0  ;;  %v508_v5 = vld [vmem:[#allocation5 + $0x168] sm:$0xff]  ;;  %v328_v6 = vld [vmem:[#allocation5 + $0x60] sm:$0xff]  ;;  %v327_v8 = vld [vmem:[#allocation5 + $0x58] sm:$0xff] }
  0x28   :  { %1995 = vmatpush3.msra.mxu1 %v510_v1  ;;  %1940 = vmatprep.subr.mxu0 %v330_v2  ;;  %v507_v7 = vld [vmem:[#allocation5 + $0x160] sm:$0xff]  ;;  %v506_v9 = vld [vmem:[#allocation5 + $0x158] sm:$0xff]  ;;  %v326_v10 = vld [vmem:[#allocation5 + $0x50] sm:$0xff] }
  0x29   :  { %1996 = vmatprep.subr.mxu1 %v509_v3  ;;  %1941 = vmatpush3.msra.mxu0 %v330_v2  ;;  %v505_v11 = vld [vmem:[#allocation5 + $0x150] sm:$0xff]  ;;  %v325_v12 = vld [vmem:[#allocation5 + $0x48] sm:$0xff]  ;;  %v324_v14 = vld [vmem:[#allocation5 + $0x40] sm:$0xff] }
  0x2a   :  { %1997 = vmatpush3.msra.mxu1 %v509_v3  ;;  %1942 = vmatprep.subr.mxu0 %v329_v4  ;;  %v504_v13 = vld [vmem:[#allocation5 + $0x148] sm:$0xff]  ;;  %v503_v15 = vld [vmem:[#allocation5 + $0x140] sm:$0xff]  ;;  %v323_v16 = vld [vmem:[#allocation5 + $0x38] sm:$0xff] }
  0x2b   :  { %1998 = vmatprep.subr.mxu1 %v508_v5  ;;  %1943 = vmatpush3.msra.mxu0 %v329_v4  ;;  %v502_v17 = vld [vmem:[#allocation5 + $0x138] sm:$0xff]  ;;  %v322_v18 = vld [vmem:[#allocation5 + $0x30] sm:$0xff]  ;;  %v321_v20 = vld [vmem:[#allocation5 + $0x28] sm:$0xff] }
  0x2c   :  { %1999 = vmatpush3.msra.mxu1 %v508_v5  ;;  %1944 = vmatprep.subr.mxu0 %v328_v6  ;;  %v501_v19 = vld [vmem:[#allocation5 + $0x130] sm:$0xff]  ;;  %v500_v21 = vld [vmem:[#allocation5 + $0x128] sm:$0xff]  ;;  %v320_v22 = vld [vmem:[#allocation5 + $0x20] sm:$0xff] }
  0x2d   :  { %2000 = vmatprep.subr.mxu1 %v507_v7  ;;  %1945 = vmatpush3.msra.mxu0 %v328_v6  ;;  %v499_v23 = vld [vmem:[#allocation5 + $0x120] sm:$0xff]  ;;  %v319_v24 = vld [vmem:[#allocation5 + $0x18] sm:$0xff]  ;;  %v318_v26 = vld [vmem:[#allocation5 + $0x10] sm:$0xff] }
  0x2e   :  { %2001 = vmatpush3.msra.mxu1 %v507_v7  ;;  %1946 = vmatprep.subr.mxu0 %v327_v8  ;;  %v498_v25 = vld [vmem:[#allocation5 + $0x118] sm:$0xff]  ;;  %v497_v27 = vld [vmem:[#allocation5 + $0x110] sm:$0xff]  ;;  %v317_v28 = vld [vmem:[#allocation5 + $0x8] sm:$0xff] }
  0x2f   :  { %2002 = vmatprep.subr.mxu1 %v506_v9  ;;  %1947 = vmatpush3.msra.mxu0 %v327_v8  ;;  %v496_v29 = vld [vmem:[#allocation5 + $0x108] sm:$0xff]  ;;  %v316_v30 = vld [vmem:[#allocation5] sm:$0xff]  ;;  %v493_v34 = vld [vmem:[#allocation5 + $0xf8] sm:$0xff] }
  0x30   :  { %2003 = vmatpush3.msra.mxu1 %v506_v9  ;;  %1948 = vmatprep.subr.mxu0 %v326_v10  ;;  %v495_v31 = vld [vmem:[#allocation5 + $0x100] sm:$0xff]  ;;  %v2433_v33 = vld [vmem:[#allocation2 + $0x8] sm:$0xff]  ;;  %v2436_v35 = vld [vmem:[#allocation2 + $0x10] sm:$0xff] }
  0x31   :  { %2004 = vmatprep.subr.mxu1 %v505_v11  ;;  %1949 = vmatpush3.msra.mxu0 %v326_v10  ;;  %v2431_v32 = vld [vmem:[#allocation2] sm:$0xff]  ;;  %v492_v36 = vld [vmem:[#allocation5 + $0xf0] sm:$0xff]  ;;  %v2442_v37 = vld [vmem:[#allocation2 + $0x18] sm:$0xff] }
  0x32   :  { %2005 = vmatpush3.msra.mxu1 %v505_v11  ;;  %1950 = vmatprep.subr.mxu0 %v325_v12  ;;  %v491_v38 = vld [vmem:[#allocation5 + $0xe8] sm:$0xff]  ;;  %v2445_v39 = vld [vmem:[#allocation2 + $0x20] sm:$0xff]  ;;  %v489_v42 = vld [vmem:[#allocation5 + $0xd8] sm:$0xff] }
  0x33   :  { %2006 = vmatprep.subr.mxu1 %v504_v13  ;;  %1951 = vmatpush3.msra.mxu0 %v325_v12  ;;  %v490_v40 = vld [vmem:[#allocation5 + $0xe0] sm:$0xff]  ;;  %v2449_v41 = vld [vmem:[#allocation2 + $0x28] sm:$0xff]  ;;  %v2453_v43 = vld [vmem:[#allocation2 + $0x30] sm:$0xff] }
  0x34   :  { %2007 = vmatpush3.msra.mxu1 %v504_v13  ;;  %1952 = vmatprep.subr.mxu0 %v324_v14  ;;  %v488_v44 = vld [vmem:[#allocation5 + $0xd0] sm:$0xff]  ;;  %v2457_v45 = vld [vmem:[#allocation2 + $0x38] sm:$0xff]  ;;  %v487_v46 = vld [vmem:[#allocation5 + $0xc8] sm:$0xff] }
  0x35   :  { %2008 = vmatprep.subr.mxu1 %v503_v15  ;;  %1953 = vmatpush3.msra.mxu0 %v324_v14  ;;  %v2461_v47 = vld [vmem:[#allocation2 + $0x40] sm:$0xff]  ;;  %v309_v49 = vld [vmem:[#allocation2 + $0x48] sm:$0xff]  ;;  %v485_v50 = vld [vmem:[#allocation5 + $0xb8] sm:$0xff] }
  0x36   :  { %2009 = vmatpush3.msra.mxu1 %v503_v15  ;;  %1954 = vmatprep.subr.mxu0 %v323_v16  ;;  %v486_v48 = vld [vmem:[#allocation5 + $0xc0] sm:$0xff]  ;;  %v310_v51 = vld [vmem:[#allocation2 + $0x50] sm:$0xff]  ;;  %v311_v53 = vld [vmem:[#allocation2 + $0x58] sm:$0xff] }
  0x37   :  { %2010 = vmatprep.subr.mxu1 %v502_v17  ;;  %1955 = vmatpush3.msra.mxu0 %v323_v16  ;;  %v484_v52 = vld [vmem:[#allocation5 + $0xb0] sm:$0xff]  ;;  %v483_v54 = vld [vmem:[#allocation5 + $0xa8] sm:$0xff]  ;;  %v312_v55 = vld [vmem:[#allocation2 + $0x60] sm:$0xff] }
  0x38   :  { %2011 = vmatpush3.msra.mxu1 %v502_v17  ;;  %1956 = vmatprep.subr.mxu0 %v322_v18  ;;  %v482_v56 = vld [vmem:[#allocation5 + $0xa0] sm:$0xff]  ;;  %v313_v57 = vld [vmem:[#allocation2 + $0x68] sm:$0xff]  ;;  %v481_v58 = vld [vmem:[#allocation5 + $0x98] sm:$0xff] }
  0x39   :  { %2012 = vmatprep.subr.mxu1 %v501_v19  ;;  %1957 = vmatpush3.msra.mxu0 %v322_v18  ;;  %v314_v59 = vld [vmem:[#allocation2 + $0x70] sm:$0xff]  ;;  %v315_v61 = vld [vmem:[#allocation2 + $0x78] sm:$0xff]  ;;  %v479_v62 = vld [vmem:[#allocation5 + $0x88] sm:$0xff] }
  0x3a   :  { %2013 = vmatpush3.msra.mxu1 %v501_v19  ;;  %1958 = vmatprep.subr.mxu0 %v321_v20  ;;  %v480_v60 = vld [vmem:[#allocation5 + $0x90] sm:$0xff]  ;;  %v478_v63 = vld [vmem:[#allocation5 + $0x80] sm:$0xff]  ;;  %v1052_v0 = vld [vmem:[#allocation7 + $0x78] sm:$0xff] }
  0x3b   :  { %2014 = vmatprep.subr.mxu1 %v500_v21  ;;  %1959 = vmatpush3.msra.mxu0 %v321_v20  ;;  %v1231_v1 = vld [vmem:[#allocation7 + $0x178] sm:$0xff]  ;;  %v1051_v2 = vld [vmem:[#allocation7 + $0x70] sm:$0xff]  ;;  %v1050_v4 = vld [vmem:[#allocation7 + $0x68] sm:$0xff] }
  0x3c   :  { %2015 = vmatpush3.msra.mxu1 %v500_v21  ;;  %1960 = vmatprep.subr.mxu0 %v320_v22  ;;  %v1230_v3 = vld [vmem:[#allocation7 + $0x170] sm:$0xff]  ;;  %v1229_v5 = vld [vmem:[#allocation7 + $0x168] sm:$0xff]  ;;  %v1049_v6 = vld [vmem:[#allocation7 + $0x60] sm:$0xff] }
  0x3d   :  { %2016 = vmatprep.subr.mxu1 %v499_v23  ;;  %1961 = vmatpush3.msra.mxu0 %v320_v22  ;;  %v1228_v7 = vld [vmem:[#allocation7 + $0x160] sm:$0xff]  ;;  %v1048_v8 = vld [vmem:[#allocation7 + $0x58] sm:$0xff]  ;;  %v1047_v10 = vld [vmem:[#allocation7 + $0x50] sm:$0xff] }
  0x3e   :  { %2017 = vmatpush3.msra.mxu1 %v499_v23  ;;  %1962 = vmatprep.subr.mxu0 %v319_v24  ;;  %v1227_v9 = vld [vmem:[#allocation7 + $0x158] sm:$0xff]  ;;  %v1226_v11 = vld [vmem:[#allocation7 + $0x150] sm:$0xff]  ;;  %v1046_v12 = vld [vmem:[#allocation7 + $0x48] sm:$0xff] }
  0x3f   :  { %2018 = vmatprep.subr.mxu1 %v498_v25  ;;  %1963 = vmatpush3.msra.mxu0 %v319_v24  ;;  %v1225_v13 = vld [vmem:[#allocation7 + $0x148] sm:$0xff]  ;;  %v1045_v14 = vld [vmem:[#allocation7 + $0x40] sm:$0xff]  ;;  %v1044_v16 = vld [vmem:[#allocation7 + $0x38] sm:$0xff] }
  0x40   :  { %2019 = vmatpush3.msra.mxu1 %v498_v25  ;;  %1964 = vmatprep.subr.mxu0 %v318_v26  ;;  %v1224_v15 = vld [vmem:[#allocation7 + $0x140] sm:$0xff]  ;;  %v1223_v17 = vld [vmem:[#allocation7 + $0x138] sm:$0xff]  ;;  %v1043_v18 = vld [vmem:[#allocation7 + $0x30] sm:$0xff] }
  0x41   :  { %2020 = vmatprep.subr.mxu1 %v497_v27  ;;  %1965 = vmatpush3.msra.mxu0 %v318_v26  ;;  %v1222_v19 = vld [vmem:[#allocation7 + $0x130] sm:$0xff]  ;;  %v1042_v20 = vld [vmem:[#allocation7 + $0x28] sm:$0xff]  ;;  %v1041_v22 = vld [vmem:[#allocation7 + $0x20] sm:$0xff] }
  0x42   :  { %2021 = vmatpush3.msra.mxu1 %v497_v27  ;;  %1966 = vmatprep.subr.mxu0 %v317_v28  ;;  %v1221_v21 = vld [vmem:[#allocation7 + $0x128] sm:$0xff]  ;;  %v1220_v23 = vld [vmem:[#allocation7 + $0x120] sm:$0xff]  ;;  %v1040_v24 = vld [vmem:[#allocation7 + $0x18] sm:$0xff] }
  0x43   :  { %2022 = vmatprep.subr.mxu1 %v496_v29  ;;  %1967 = vmatpush3.msra.mxu0 %v317_v28  ;;  %v1219_v25 = vld [vmem:[#allocation7 + $0x118] sm:$0xff]  ;;  %v1039_v26 = vld [vmem:[#allocation7 + $0x10] sm:$0xff]  ;;  %v1038_v28 = vld [vmem:[#allocation7 + $0x8] sm:$0xff] }
  0x44   :  { %2023 = vmatpush3.msra.mxu1 %v496_v29  ;;  %1968 = vmatprep.subr.mxu0 %v316_v30  ;;  %v1218_v27 = vld [vmem:[#allocation7 + $0x110] sm:$0xff]  ;;  %v1217_v29 = vld [vmem:[#allocation7 + $0x108] sm:$0xff] }
  0x45   :  { %2024 = vmatprep.subr.mxu1 %v495_v31  ;;  %1969 = vmatpush3.msra.mxu0 %v316_v30  ;;  %v1037_v30 = vld [vmem:[#allocation7] sm:$0xff] }
  0x46   :  { %1970 = vmatprep.mubr.f32.mxu0 %v2431_v32  ;;  %2025 = vmatpush3.msra.mxu1 %v495_v31  ;;  %v1216_v31 = vld [vmem:[#allocation7 + $0x100] sm:$0xff] }
  0x47   :  { %2026 = vmatprep.mubr.f32.mxu1 %v2431_v32  ;;  %1971 = vmatmul.mubr.f32.vlgmr.msra.gmra.mxu0 %v2433_v33 }
  0x48   :  { %2027 = vmatmul.mubr.f32.vlgmr.msra.gmra.mxu1 %v2433_v33  ;;  %2050 = vmatprep.subr.mxu0 %v493_v34 }
  0x49   :  { %1973 = vmatprep.mubr.f32.mxu0 %v2436_v35  ;;  %2051 = vmatpush3.msra.mxu0 %v493_v34 }
  0x4a   :  { %2029 = vmatprep.mubr.f32.mxu1 %v2436_v35  ;;  %2052 = vmatprep.subr.mxu0 %v492_v36 }
  0x4b   :  { %2053 = vmatpush3.msra.mxu0 %v492_v36  ;;  %2106 = vmatprep.subr.mxu1 %v1052_v0 }
  0x4c   :  { %2030 = vmatmul.mubr.f32.gmra.mxu1 %v2442_v37  ;;  %1974 = vmatmul.mubr.f32.gmra.mxu0 %v2442_v37 }
  0x4d   :  { %2054 = vmatprep.subr.mxu0 %v491_v38  ;;  %1976 = vmatprep.mubr.f32.mxu0 %v2445_v39 }
  0x4e   :  { %2055 = vmatpush3.msra.mxu0 %v491_v38  ;;  %2032 = vmatprep.mubr.f32.mxu1 %v2445_v39 }
  0x4f   :  { %2056 = vmatprep.subr.mxu0 %v490_v40  ;;  %2107 = vmatpush3.msra.mxu1 %v1052_v0 }
  0x50   :  { %2057 = vmatpush3.msra.mxu0 %v490_v40  ;;  %2033 = vmatmul.mubr.f32.gmra.mxu1 %v2449_v41 }
  0x51   :  { %1977 = vmatmul.mubr.f32.gmra.mxu0 %v2449_v41  ;;  %2058 = vmatprep.subr.mxu0 %v489_v42 }
  0x52   :  { %2059 = vmatpush3.msra.mxu0 %v489_v42  ;;  %1979 = vmatprep.mubr.f32.mxu0 %v2453_v43 }
  0x53   :  { %2060 = vmatprep.subr.mxu0 %v488_v44  ;;  %2035 = vmatprep.mubr.f32.mxu1 %v2453_v43 }
  0x54   :  { %2061 = vmatpush3.msra.mxu0 %v488_v44  ;;  %2036 = vmatmul.mubr.f32.gmra.mxu1 %v2457_v45 }
  0x55   :  { %1980 = vmatmul.mubr.f32.gmra.mxu0 %v2457_v45  ;;  %2062 = vmatprep.subr.mxu0 %v487_v46 }
  0x56   :  { %2063 = vmatpush3.msra.mxu0 %v487_v46  ;;  %1982 = vmatprep.mubr.f32.mxu0 %v2461_v47 }
  0x57   :  { %2064 = vmatprep.subr.mxu0 %v486_v48  ;;  %2038 = vmatprep.mubr.f32.mxu1 %v2461_v47 }
  0x58   :  { %2065 = vmatpush3.msra.mxu0 %v486_v48  ;;  %2039 = vmatmul.mubr.f32.gmra.mxu1 %v309_v49 }
  0x59   :  { %1983 = vmatmul.mubr.f32.gmra.mxu0 %v309_v49  ;;  %2066 = vmatprep.subr.mxu0 %v485_v50 }
  0x5a   :  { %2067 = vmatpush3.msra.mxu0 %v485_v50  ;;  %1985 = vmatprep.mubr.f32.mxu0 %v310_v51 }
  0x5b   :  { %2068 = vmatprep.subr.mxu0 %v484_v52  ;;  %2041 = vmatprep.mubr.f32.mxu1 %v310_v51 }
  0x5c   :  { %2069 = vmatpush3.msra.mxu0 %v484_v52  ;;  %2042 = vmatmul.mubr.f32.gmra.mxu1 %v311_v53 }
  0x5d   :  { %1986 = vmatmul.mubr.f32.gmra.mxu0 %v311_v53  ;;  %2070 = vmatprep.subr.mxu0 %v483_v54 }
  0x5e   :  { %2071 = vmatpush3.msra.mxu0 %v483_v54  ;;  %1988 = vmatprep.mubr.f32.mxu0 %v312_v55 }
  0x5f   :  { %2072 = vmatprep.subr.mxu0 %v482_v56  ;;  %2044 = vmatprep.mubr.f32.mxu1 %v312_v55 }
  0x60   :  { %2073 = vmatpush3.msra.mxu0 %v482_v56  ;;  %2045 = vmatmul.mubr.f32.gmra.mxu1 %v313_v57 }
  0x61   :  { %1989 = vmatmul.mubr.f32.gmra.mxu0 %v313_v57  ;;  %2074 = vmatprep.subr.mxu0 %v481_v58 }
  0x62   :  { %2075 = vmatpush3.msra.mxu0 %v481_v58  ;;  %1991 = vmatprep.mubr.f32.mxu0 %v314_v59 }
  0x63   :  { %2076 = vmatprep.subr.mxu0 %v480_v60  ;;  %2047 = vmatprep.mubr.f32.mxu1 %v314_v59 }
  0x64   :  { %2077 = vmatpush3.msra.mxu0 %v480_v60  ;;  %2048 = vmatmul.mubr.f32.gmra.mxu1 %v315_v61 }
  0x65   :  { %1992 = vmatmul.mubr.f32.gmra.mxu0 %v315_v61  ;;  %2078 = vmatprep.subr.mxu0 %v479_v62 }
  0x66   :  { %2079 = vmatpush3.msra.mxu0 %v479_v62  ;;  %2082 = vmatprep.mubr.f32.mxu0 %v2431_v32  ;;  %v2476_v32 = vld [vmem:[#allocation7 + $0xf8] sm:$0xff] }
  0x67   :  { %2080 = vmatprep.subr.mxu0 %v478_v63  ;;  %2108 = vmatprep.subr.mxu1 %v1051_v2 }
  0x68   :  { %2081 = vmatpush3.msra.mxu0 %v478_v63  ;;  %2109 = vmatpush3.msra.mxu1 %v1051_v2 }
  0x69   :  { %2083 = vmatmul.mubr.f32.vlgmr.msra.gmra.mxu0 %v2433_v33  ;;  %2162 = vmatprep.subr.mxu0 %v1231_v1 }
  0x6a   :  { %2085 = vmatprep.mubr.f32.mxu0 %v2436_v35  ;;  %2163 = vmatpush3.msra.mxu0 %v1231_v1 }
  0x6b   :  { %2164 = vmatprep.subr.mxu0 %v1230_v3  ;;  %2110 = vmatprep.subr.mxu1 %v1050_v4 }
  0x6c   :  { %2165 = vmatpush3.msra.mxu0 %v1230_v3  ;;  %2111 = vmatpush3.msra.mxu1 %v1050_v4 }
  0x6d   :  { %2086 = vmatmul.mubr.f32.gmra.mxu0 %v2442_v37  ;;  %2166 = vmatprep.subr.mxu0 %v1229_v5 }
  0x6e   :  { %2088 = vmatprep.mubr.f32.mxu0 %v2445_v39  ;;  %2167 = vmatpush3.msra.mxu0 %v1229_v5 }
  0x6f   :  { %2112 = vmatprep.subr.mxu1 %v1049_v6  ;;  %2168 = vmatprep.subr.mxu0 %v1228_v7 }
  0x70   :  { %2113 = vmatpush3.msra.mxu1 %v1049_v6  ;;  %2169 = vmatpush3.msra.mxu0 %v1228_v7 }
  0x71   :  { %2089 = vmatmul.mubr.f32.gmra.mxu0 %v2449_v41  ;;  %2114 = vmatprep.subr.mxu1 %v1048_v8  ;;  %v59_v41 = vlaneseq }
  0x72   :  { %2091 = vmatprep.mubr.f32.mxu0 %v2453_v43  ;;  %2170 = vmatprep.subr.mxu0 %v1227_v9 }
  0x73   :  { %2115 = vmatpush3.msra.mxu1 %v1048_v8  ;;  %2171 = vmatpush3.msra.mxu0 %v1227_v9  ;;  %v2503_v46 = vshrl.u32 %v59_v41, 7  ;;  %v3048_v41 = vld [vmem:[%s3202_s3 + $0x3] ss:$0 sm:$0xff] }
  0x74   :  { %2116 = vmatprep.subr.mxu1 %v1047_v10  ;;  %2172 = vmatprep.subr.mxu0 %v1226_v11 }
  0x75   :  { %2092 = vmatmul.mubr.f32.gmra.mxu0 %v2457_v45  ;;  %2117 = vmatpush3.msra.mxu1 %v1047_v10  ;;  %v61_v50 = vadd.s32 8, %v2503_v46  ;;  %v66_v56 = vadd.s32 48, %v2503_v46  ;;  %v80_v62 = vand.u32 15, %v2503_v46  ;;  %v65_v63 = vadd.s32 40, %v2503_v46 }
  0x76   :  { %2094 = vmatprep.mubr.f32.mxu0 %v2461_v47  ;;  %2173 = vmatpush3.msra.mxu0 %v1226_v11  ;;  %v2531_v0 = vadd.s32 96, %v2503_v46  ;;  %vm3207_vm0 = vcmp.lt.s32.totalorder %v2503_v46, 1  ;;  %v2540_v7 = vadd.s32 120, %v2503_v46  ;;  %vm3208_vm2 = vcmp.lt.s32.totalorder %v2503_v46, 7 }
  0x77   :  { %2118 = vmatprep.subr.mxu1 %v1046_v12  ;;  %2174 = vmatprep.subr.mxu0 %v1225_v13  ;;  %v122_v5 = vand.u32 15, %v66_v56  ;;  %vm2557_vm4 = vcmp.ne.s32.totalorder %v80_v62, 0 }
  0x78   :  { %2119 = vmatpush3.msra.mxu1 %v1046_v12  ;;  %2175 = vmatpush3.msra.mxu0 %v1225_v13  ;;  %v2555_v12 = vadd.s32 112, %v2503_v46 }
  0x79   :  { %2095 = vmatmul.mubr.f32.gmra.mxu0 %v309_v49  ;;  %2120 = vmatprep.subr.mxu1 %v1045_v14  ;;  %vm2600_vm8 = vcmp.ne.s32.totalorder %v122_v5, 0 }
  0x7a   :  { %2097 = vmatprep.mubr.f32.mxu0 %v310_v51  ;;  %2176 = vmatprep.subr.mxu0 %v1224_v15  ;;  %v62_v51 = vadd.s32 16, %v2503_v46 }
  0x7b   :  { %2121 = vmatpush3.msra.mxu1 %v1045_v14  ;;  %2177 = vmatpush3.msra.mxu0 %v1224_v15  ;;  %v115_v14 = vand.u32 15, %v65_v63  ;;  %v67_v15 = vadd.s32 56, %v2503_v46 }
  0x7c   :  { %2122 = vmatprep.subr.mxu1 %v1044_v16  ;;  %2178 = vmatprep.subr.mxu0 %v1223_v17  ;;  %v94_v60 = vand.u32 15, %v62_v51 }
  0x7d   :  { %2098 = vmatmul.mubr.f32.gmra.mxu0 %v311_v53  ;;  %2123 = vmatpush3.msra.mxu1 %v1044_v16  ;;  %v64_v53 = vadd.s32 32, %v2503_v46  ;;  %v164_v16 = vand.u32 15, %v2531_v0  ;;  %vm2596_vm7 = vcmp.ne.s32.totalorder %v115_v14, 15 }
  0x7e   :  { %2100 = vmatprep.mubr.f32.mxu0 %v312_v55  ;;  %2179 = vmatpush3.msra.mxu0 %v1223_v17  ;;  %v63_v55 = vadd.s32 24, %v2503_v46  ;;  %vm2549_vm3 = vcmp.ne.s32.totalorder %v94_v60, 0 }
  0x7f   :  { %2124 = vmatprep.subr.mxu1 %v1043_v18  ;;  %2180 = vmatprep.subr.mxu0 %v1222_v19  ;;  %v108_v2 = vand.u32 15, %v64_v53  ;;  %vm2760_vm14 = vcmp.ne.s32.totalorder %v164_v16, 0  ;;  %v3241_v16 = vmov 0 }
  0x80   :  { %2125 = vmatpush3.msra.mxu1 %v1043_v18  ;;  %2181 = vmatpush3.msra.mxu0 %v1222_v19  ;;  %v101_v4 = vand.u32 15, %v63_v55  ;;  %v2567_v19 = vadd.s32 72, %v2503_v46 }
  0x81   :  { %2101 = vmatmul.mubr.f32.gmra.mxu0 %v313_v57  ;;  %2126 = vmatprep.subr.mxu1 %v1042_v20  ;;  %v2521_v57 = vadd.s32 64, %v2503_v46  ;;  %vm2583_vm6 = vcmp.ne.s32.totalorder %v108_v2, 0 }
  0x82   :  { %2103 = vmatprep.mubr.f32.mxu0 %v314_v59  ;;  %2182 = vmatprep.subr.mxu0 %v1221_v21  ;;  %v87_v59 = vand.u32 15, %v61_v50  ;;  %vm2579_vm5 = vcmp.ne.s32.totalorder %v101_v4, 15  ;;  %v129_v50 = vand.u32 15, %v67_v15  ;;  %v143_v53 = vand.u32 15, %v2567_v19 }
  0x83   :  { %2127 = vmatpush3.msra.mxu1 %v1042_v20  ;;  %2183 = vmatpush3.msra.mxu0 %v1221_v21  ;;  %v136_v6 = vand.u32 15, %v2521_v57  ;;  %v2570_v20 = vadd.s32 88, %v2503_v46  ;;  %v2573_v21 = vadd.s32 104, %v2503_v46 }
  0x84   :  { %2128 = vmatprep.subr.mxu1 %v1041_v22  ;;  %2184 = vmatprep.subr.mxu0 %v1220_v23  ;;  %vm2544_vm1 = vcmp.ne.s32.totalorder %v87_v59, 15  ;;  %vm2637_vm9 = vcmp.ne.s32.totalorder %v129_v50, 15  ;;  %v2659_v50 = vld [vmem:[%s3202_s3] ss:$0 sm:$0xff]  ;;  %vm2696_vm11 = vcmp.ne.s32.totalorder %v143_v53, 15 }
  0x85   :  { %2104 = vmatmul.mubr.f32.gmra.mxu0 %v315_v61  ;;  %2129 = vmatpush3.msra.mxu1 %v1041_v22  ;;  %v2526_v61 = vadd.s32 80, %v2503_v46  ;;  %vm2674_vm10 = vcmp.ne.s32.totalorder %v136_v6, 0  ;;  %v3240_v0 = vand.u32 15, %v2573_v21 }
  0x86   :  { %2185 = vmatpush3.msra.mxu0 %v1220_v23  ;;  %2130 = vmatprep.subr.mxu1 %v1040_v24 }
  0x87   :  { %2186 = vmatprep.subr.mxu0 %v1219_v25  ;;  %2131 = vmatpush3.msra.mxu1 %v1040_v24  ;;  %v150_v11 = vand.u32 15, %v2526_v61  ;;  %vm2773_vm15 = vcmp.ne.s32.totalorder %v3240_v0, 15  ;;  %v3246_v0 = vmov 0 }
  0x88   :  { %2187 = vmatpush3.msra.mxu0 %v1219_v25  ;;  %2132 = vmatprep.subr.mxu1 %v1039_v26  ;;  %v3242_v16 = vsel %vm2773_vm15, 4294967295, %v3241_v16 }
  0x89   :  { %2188 = vmatprep.subr.mxu0 %v1218_v27  ;;  %2133 = vmatpush3.msra.mxu1 %v1039_v26  ;;  %vm2720_vm12 = vcmp.ne.s32.totalorder %v150_v11, 0  ;;  %v3025_v26 = vld [vmem:[%s3202_s3 + $0x2] ss:$0 sm:$0xff] }
  0x8a   :  { %2189 = vmatpush3.msra.mxu0 %v1218_v27  ;;  %2134 = vmatprep.subr.mxu1 %v1038_v28 }
  0x8b   :  { %2190 = vmatprep.subr.mxu0 %v1217_v29  ;;  %2135 = vmatpush3.msra.mxu1 %v1038_v28 }
  0x8c   :  { %2191 = vmatpush3.msra.mxu0 %v1217_v29  ;;  %2136 = vmatprep.subr.mxu1 %v1037_v30 }
  0x8d   :  { %2192 = vmatprep.subr.mxu0 %v1216_v31  ;;  %2137 = vmatpush3.msra.mxu1 %v1037_v30 }
  0x8e   :  { %2193 = vmatpush3.msra.mxu0 %v1216_v31  ;;  %2218 = vmatprep.subr.mxu1 %v2476_v32 }
 0x107   :  { %v2479_v33 = vpop.f32.mrf.mxu0 }
 0x108   :  { %v2481_v34 = vpop.f32.mrf.mxu1  ;;  %v657_v28 = vrot.slane %v2479_v33, 7 }
 0x109   :  { %v2483_v35 = vpop.f32.mrf.mxu0  ;;  %v738_v22 = vrot.slane %v2481_v34, 1 }
 0x10a   :  { %v2485_v36 = vpop.f32.mrf.mxu1  ;;  %v656_v17 = vrot.slane %v2483_v35, 7 }
 0x10b   :  { %v3205_v29 = vrot.slane %v2485_v36, 1 }
 0x10c   :  { %v2487_v37 = vpop.f32.mrf.mxu1  ;;  %v2489_v38 = vpop.f32.mrf.mxu0 }
 0x10d   :  { %v740_v35 = vrot.slane %v2487_v37, 1  ;;  %v157_v37 = vand.u32 15, %v2570_v20  ;;  %v659_v63 = vrot.slane %v2489_v38, 7 }
 0x10e   :  { %v2491_v39 = vpop.f32.mrf.mxu1  ;;  %v2493_v40 = vpop.f32.mrf.mxu0 }
 0x10f   :  { %v739_v23 = vrot.slane %v2491_v39, 1  ;;  %v658_v30 = vrot.slane %v2493_v40, 7  ;;  %v687_v40 = vsel %vm3207_vm0, %v656_v17, %v657_v28  ;;  %vm2730_vm13 = vcmp.ne.s32.totalorder %v157_v37, 15 }
 0x110   :  { %v2495_v42 = vpop.f32.mrf.mxu1 }
 0x111   :  { %v2497_v43 = vpop.f32.mrf.mxu0  ;;  %v742_v55 = vrot.slane %v2495_v42, 1  ;;  %v767_v62 = vsel %vm3208_vm2, %v738_v22, %v739_v23  ;;  %v768_v42 = vsel %vm3208_vm2, %v3205_v29, %v738_v22 }
 0x112   :  { %v2499_v44 = vpop.f32.mrf.mxu1  ;;  %v661_v19 = vrot.slane %v2497_v43, 7 }
 0x113   :  { %v2501_v45 = vpop.f32.mrf.mxu0  ;;  %v741_v39 = vrot.slane %v2499_v44, 1 }
 0x114   :  { %v2507_v48 = vpop.f32.mrf.mxu1  ;;  %v660_v56 = vrot.slane %v2501_v45, 7  ;;  %v686_v45 = vsel %vm3207_vm0, %v657_v28, %v658_v30 }
 0x115   :  { %v2505_v47 = vpop.f32.mrf.mxu0  ;;  %v765_v38 = vsel %vm3208_vm2, %v740_v35, %v741_v39  ;;  %v744_v22 = vrot.slane %v2507_v48, 1  ;;  %v764_v43 = vsel %vm3208_vm2, %v741_v39, %v742_v55 }
 0x116   :  { %v2516_v54 = vpop.f32.mrf.mxu1  ;;  %v663_v48 = vrot.slane %v2505_v47, 7 }
 0x117   :  { %v2509_v49 = vpop.f32.mrf.mxu0  ;;  %v743_v2 = vrot.slane %v2516_v54, 1  ;;  %v766_v54 = vsel %vm3208_vm2, %v739_v23, %v740_v35  ;;  %v723_v23 = vsel %vm2549_vm3, %v686_v45, 0.0  ;;  %v684_v35 = vsel %vm3207_vm0, %v659_v63, %v660_v56 }
 0x118   :  { %v2536_v3 = vpop.f32.mrf.mxu1  ;;  %v662_v5 = vrot.slane %v2509_v49, 7  ;;  %v803_v49 = vsel %vm2544_vm1, %v767_v62, 0.0  ;;  %v805_v62 = vsel %vm2579_vm5, %v765_v38, 0.0 }
 0x119   :  { %v2513_v52 = vpop.f32.mrf.mxu0 }
 0x11a   :  { %v2577_v24 = vpop.f32.mrf.mxu1  ;;  %v2670_v47 = vsel %vm3207_vm0, %v661_v19, %v662_v5 }
 0x11b   :  { %v2523_v58 = vpop.f32.mrf.mxu0  ;;  %v745_v45 = vrot.slane %v2577_v24, 1  ;;  %v725_v24 = vsel %vm2583_vm6, %v684_v35, 0.0  ;;  %v727_v27 = vsel %vm2600_vm8, %v2670_v47, 0.0 }
 0x11c   :  { %v2613_v59 = vpop.f32.mrf.mxu1 }
 0x11d   :  { %v2533_v1 = vpop.f32.mrf.mxu0 }
 0x11f   :  { %v2542_v8 = vpop.f32.mrf.mxu0 }
 0x120   :  { %v666_v20 = vrot.slane %v2542_v8, 7 }
 0x121   :  { %v2564_v18 = vpop.f32.mrf.mxu0 }
 0x123   :  { %v2591_v31 = vpop.f32.mrf.mxu0 }
 0x125   :  { %v2604_v33 = vpop.f32.mrf.mxu0 }
 0x126   :  { %v3204_v60 = vrot.slane %v2604_v33, 7 }
 0x127   :  { %v2620_v4 = vpop.f32.mrf.mxu0 }
 0x128   :  { %v688_v14 = vsel %vm3207_vm0, %v3204_v60, %v656_v17  ;;  %v685_v17 = vsel %vm3207_vm0, %v658_v30, %v659_v63  ;;  %v2647_v60 = vpop.f32.mrf.mxu1  ;;  %v763_v63 = vsel %vm3208_vm2, %v742_v55, %v743_v2  ;;  %v683_v55 = vsel %vm3207_vm0, %v660_v56, %v661_v19 }
 0x129   :  { %v2084_v28 = vpop.f32.mrf.mxu0  ;;  %v721_v30 = vsel %vm2557_vm4, %v688_v14, 0.0  ;;  %v746_v14 = vrot.slane %v2536_v3, 1  ;;  %v2694_v3 = vld [vmem:[%s3202_s3 + $0x1] ss:$0 sm:$0xff]  ;;  %v3232_v19 = vmov 0  ;;  %s2387_s3 = smov [#allocation8]  }
 0x12a   :  { %v890_v29 = vadd.f32 %v2084_v28, %v687_v40  ;;  %v2688_v57 = vpop.f32.mrf.mxu1  ;;  %v3233_v19 = vsel %vm2696_vm11, 4294967295, %v3232_v19  ;;  %s1729_s11 = sshll.u32 %s2387_s3, 4  ;;  %s1730_s11 = int_to_ptr.vmem [resolvable:$true] %s1729_s11 }
 0x12b   :  { %v884_v40 = vpop.f32.mrf.mxu0  ;;  %s2356_s12 = scalar_lea.vmem %s1730_s11, 2048  ;;  %p2361_p2 = scmp.lt.s32.totalorder %s1730_s11, %s1730_s11 }
 0x12c   :  { %v964_v39 = vadd.f32 %v890_v29, %v803_v49  ;;  %v885_v28 = vadd.f32 %v884_v40, %v721_v30  ;;  %v2685_v29 = vsel %vm3208_vm2, %v743_v2, %v744_v22  ;;  %v3206_v49 = vrot.slane %v2513_v52, 7  ;;  %p2357_p1 = scmp.ne.s32.totalorder %s1730_s11, %s2356_s12  ;;  %p2362_p3 = scmp.lt.s32.totalorder %s2356_s12, %s2356_s12 }
 0x12d   :  { %v2087_v38 = vpop.f32.mrf.mxu0  ;;  %v664_v2 = vrot.slane %v2523_v58, 7  ;;  %v807_v40 = vsel %vm2596_vm7, %v763_v63, 0.0 }
 0x12e   :  { %v985_v6 = vmul.f32 %v2659_v50, %v964_v39  ;;  %v963_v30 = vadd.f32 %v885_v28, %v768_v42  ;;  %v900_v56 = vadd.f32 %v2087_v38, %v685_v17  ;;  %v681_v39 = vsel %vm3207_vm0, %v662_v5, %v663_v48  ;;  %p2363_p4 = por %p2362_p3, %p2361_p2 }
 0x12f   :  { %v894_v35 = vpop.f32.mrf.mxu0  ;;  %v761_v28 = vsel %vm3208_vm2, %v744_v22, %v745_v45  ;;  %v747_v38 = vrot.slane %v2647_v60, 1  ;;  %v2716_v5 = vsel %vm3208_vm2, %v745_v45, %v746_v14  ;;  %v2725_v22 = vpop.f32.mrf.mxu1 }
 0x130   :  { %v984_v42 = vmul.f32 %v2659_v50, %v963_v30  ;;  %v966_v17 = vadd.f32 %v900_v56, %v805_v62  ;;  %v895_v53 = vadd.f32 %v894_v35, %v723_v23  ;;  %v1006_v63 = vadd.f32 %v2694_v3, %v985_v6  ;;  %p2364_p5 = pnand %p2363_p4, %p2357_p1 }
 0x131   :  { %v2090_v44 = vpop.f32.mrf.mxu0  ;;  %v667_v23 = vrot.slane %v2533_v1, 7  ;;  %v3236_v6 = vmov 0  ;;  %v809_v61 = vsel %vm2637_vm9, %v761_v28, 0.0  ;;  %v679_v35 = vsel %vm3207_vm0, %v664_v2, %v3206_v49  ;;  %v2754_v49 = vpop.f32.mrf.mxu1  ;;  %v1210_v1 = vld [vmem:[#allocation7 + $0xd8] sm:$0xff] }
 0x132   :  { %v987_v62 = vmul.f32 %v2659_v50, %v966_v17  ;;  %v965_v30 = vadd.f32 %v895_v53, %v766_v54  ;;  %v910_v56 = vadd.f32 %v2090_v44, %v683_v55  ;;  %v3237_v6 = vsel %vm2730_vm13, 4294967295, %v3236_v6 }
 0x133   :  { %v904_v45 = vpop.f32.mrf.mxu0  ;;  %v1005_v11 = vadd.f32 %v2694_v3, %v984_v42  ;;  %v680_v44 = vsel %vm3207_vm0, %v663_v48, %v664_v2  ;;  %v749_v17 = vrot.slane %v2725_v22, 1  ;;  %v2746_v53 = vmax.f32 %v1006_v63, 0.0 }
 0x134   :  { %v986_v37 = vmul.f32 %v2659_v50, %v965_v30  ;;  %v968_v54 = vadd.f32 %v910_v56, %v807_v40  ;;  %v905_v55 = vadd.f32 %v904_v45, %v725_v24  ;;  %v759_v58 = vsel %vm3208_vm2, %v746_v14, %v747_v38 }
 0x135   :  { %v2093_v28 = vpop.f32.mrf.mxu0  ;;  %v2748_v42 = vmax.f32 %v1005_v11, 0.0  ;;  %v1008_v24 = vadd.f32 %v2694_v3, %v987_v62  ;;  %v669_v63 = vrot.slane %v2564_v18, 7  ;;  %v750_v30 = vrot.slane %v2688_v57, 1 }
 0x136   :  { %v967_v48 = vadd.f32 %v905_v55, %v764_v43  ;;  %v920_v8 = vadd.f32 %v2093_v28, %v681_v39  ;;  %v1007_v2 = vadd.f32 %v2694_v3, %v986_v37  ;;  %v989_v14 = vmul.f32 %v2659_v50, %v968_v54  ;;  %v1213_v39 = vld [vmem:[#allocation7 + $0xf0] sm:$0xff]  ;;  %v2782_v54 = vpop.f32.mrf.mxu1 }
 0x137   :  { %2138 = vmatprep.mubr.f32.mxu1 %v2748_v42  ;;  %2194 = vmatprep.mubr.f32.mxu0 %v2748_v42  ;;  %v914_v43 = vpop.f32.mrf.mxu0  ;;  %v729_v62 = vsel %vm2674_vm10, %v680_v44, 0.0  ;;  %v668_v44 = vrot.slane %v2591_v31, 7  ;;  %v811_v21 = vsel %vm2696_vm11, %v759_v58, 0.0  ;;  %v1212_v31 = vld [vmem:[#allocation7 + $0xe8] sm:$0xff]  ;;  %v3244_v58 = vrot.slane %v2613_v59, 1 }
 0x138   :  { %v988_v56 = vmul.f32 %v2659_v50, %v967_v48  ;;  %v970_v45 = vadd.f32 %v920_v8, %v809_v61  ;;  %v915_v11 = vadd.f32 %v914_v43, %v727_v27  ;;  %2139 = vmatmul.mubr.f32.vlgmr.msra.gmra.mxu1 %v2746_v53  ;;  %2195 = vmatmul.mubr.f32.vlgmr.msra.gmra.mxu0 %v2746_v53  ;;  %v2780_v37 = vmax.f32 %v1007_v2, 0.0 }
 0x139   :  { %2219 = vmatpush3.msra.mxu1 %v2476_v32  ;;  %v2096_v55 = vpop.f32.mrf.mxu0  ;;  %v677_v27 = vsel %vm3207_vm0, %v666_v20, %v667_v23  ;;  %v3243_v61 = vrot.slane %v2513_v52, 7  ;;  %v2798_v32 = vmax.f32 %v1008_v24, 0.0  ;;  %v757_v2 = vsel %vm3208_vm2, %v3244_v58, %v749_v17 }
 0x13a   :  { %v969_v48 = vadd.f32 %v915_v11, %v2685_v29  ;;  %v930_v8 = vadd.f32 %v2096_v55, %v679_v35  ;;  %2220 = vmatprep.subr.mxu1 %v1213_v39  ;;  %2141 = vmatprep.mubr.f32.mxu1 %v2780_v37  ;;  %v991_v52 = vmul.f32 %v2659_v50, %v970_v45  ;;  %v751_v35 = vrot.slane %v2782_v54, 1 }
 0x13b   :  { %v678_v28 = vsel %vm3207_vm0, %v3243_v61, %v666_v20  ;;  %2197 = vmatprep.mubr.f32.mxu0 %v2780_v37  ;;  %2221 = vmatpush3.msra.mxu1 %v1213_v39  ;;  %v924_v29 = vpop.f32.mrf.mxu0  ;;  %v1009_v20 = vadd.f32 %v2694_v3, %v988_v56  ;;  %v1010_v24 = vadd.f32 %v2694_v3, %v989_v14  ;;  %v3245_v43 = vand.u32 15, %v2540_v7  ;;  %v1211_v14 = vld [vmem:[#allocation7 + $0xe0] sm:$0xff] }
 0x13c   :  { %v3248_v11 = vand.u32 15, %v2555_v12  ;;  %v3249_v45 = vmov 0  ;;  %v990_v39 = vmul.f32 %v2659_v50, %v969_v48  ;;  %v972_v55 = vadd.f32 %v930_v8, %v811_v21  ;;  %2142 = vmatmul.mubr.f32.gmra.mxu1 %v2798_v32  ;;  %2198 = vmatmul.mubr.f32.gmra.mxu0 %v2798_v32 }
 0x13d   :  { %vm2813_vm0 = vcmp.ne.s32.totalorder %v3245_v43, 15  ;;  %v925_v61 = vadd.f32 %v924_v29, %v729_v62  ;;  %v731_v7 = vsel %vm2720_vm12, %v678_v28, 0.0  ;;  %v752_v56 = vrot.slane %v2754_v49, 1  ;;  %2222 = vmatprep.subr.mxu1 %v1212_v31  ;;  %v2099_v58 = vpop.f32.mrf.mxu0 }
 0x13e   :  { %v3247_v0 = vsel %vm2813_vm0, 4294967295, %v3246_v0  ;;  %vm2819_vm2 = vcmp.ne.s32.totalorder %v3248_v11, 0  ;;  %v813_v12 = vsel %vm2730_vm13, %v757_v2, 0.0  ;;  %v2831_v43 = vmax.f32 %v1009_v20, 0.0  ;;  %2223 = vmatpush3.msra.mxu1 %v1212_v31 }
 0x13f   :  { %v3250_v45 = vsel %vm2819_vm2, 4294967295, %v3249_v45  ;;  %vm3251_vm11 = vcmp.lt.s32.totalorder %v2503_v46, 1  ;;  %v670_v21 = vrot.slane %v2620_v4, 7  ;;  %v971_v48 = vadd.f32 %v925_v61, %v2716_v5  ;;  %2224 = vmatprep.subr.mxu1 %v1211_v14  ;;  %v934_v2 = vpop.f32.mrf.mxu0  ;;  %v1209_v61 = vld [vmem:[#allocation7 + $0xd0] sm:$0xff] }
 0x140   :  { %v676_v62 = vsel %vm3251_vm11, %v667_v23, %v668_v44  ;;  %v940_v28 = vadd.f32 %v2099_v58, %v677_v27  ;;  %v1011_v8 = vadd.f32 %v2694_v3, %v990_v39  ;;  %v993_v29 = vmul.f32 %v2659_v50, %v972_v55  ;;  %2144 = vmatprep.mubr.f32.mxu1 %v2831_v43 }
 0x141   :  { %v2842_v20 = vmax.f32 %v1010_v24, 0.0  ;;  %vm3252_vm11 = vcmp.lt.s32.totalorder %v2503_v46, 7  ;;  %v1012_v5 = vadd.f32 %v2694_v3, %v991_v52  ;;  %v992_v23 = vmul.f32 %v2659_v50, %v971_v48  ;;  %2200 = vmatprep.mubr.f32.mxu0 %v2831_v43  ;;  %2225 = vmatpush3.msra.mxu1 %v1211_v14  ;;  %v2102_v55 = vpop.f32.mrf.mxu0  ;;  %v1208_v48 = vld [vmem:[#allocation7 + $0xc8] sm:$0xff] }
 0x142   :  { %v755_v4 = vsel %vm3252_vm11, %v750_v30, %v751_v35  ;;  %v974_v27 = vadd.f32 %v940_v28, %v813_v12  ;;  %v935_v31 = vadd.f32 %v934_v2, %v731_v7  ;;  %v2853_v11 = vmax.f32 %v1011_v8, 0.0  ;;  %vm3254_vm13 = vmmov %vm3252_vm11  ;;  %2226 = vmatprep.subr.mxu1 %v1210_v1 }
 0x143   :  { %v3253_v24 = vrot.slane %v2613_v59, 1  ;;  %2145 = vmatmul.mubr.f32.gmra.mxu1 %v2842_v20  ;;  %2201 = vmatmul.mubr.f32.gmra.mxu0 %v2842_v20  ;;  %vm3255_vm11 = vcmp.lt.s32.totalorder %v2503_v46, 1  ;;  %v733_v14 = vsel %vm2760_vm14, %v676_v62, 0.0  ;;  %v3256_v59 = vrot.slane %v2485_v36, 1  ;;  %v944_v58 = vpop.f32.mrf.mxu0 }
 0x144   :  { %v675_v52 = vsel %vm3255_vm11, %v668_v44, %v669_v63  ;;  %v815_v7 = vsel %vm2773_vm15, %v755_v4, 0.0  ;;  %2147 = vmatprep.mubr.f32.mxu1 %v2853_v11  ;;  %v674_v44 = vsel %vm3255_vm11, %v669_v63, %v670_v21  ;;  %v995_v36 = vmul.f32 %v2659_v50, %v974_v27  ;;  %2227 = vmatpush3.msra.mxu1 %v1210_v1 }
 0x145   :  { %v758_v39 = vsel %vm3254_vm13, %v747_v38, %v3253_v24  ;;  %v769_v60 = vsel %vm3254_vm13, %v752_v56, %v3256_v59  ;;  %v950_v12 = vadd.f32 %v2102_v55, %v675_v52  ;;  %2203 = vmatprep.mubr.f32.mxu0 %v2853_v11  ;;  %v2884_v62 = vmax.f32 %v1012_v5, 0.0  ;;  %2228 = vmatprep.subr.mxu1 %v1209_v61  ;;  %v2105_v5 = vpop.f32.mrf.mxu0  ;;  %v1206_v24 = vld [vmem:[#allocation7 + $0xb8] sm:$0xff] }
 0x146   :  { %v973_v38 = vadd.f32 %v935_v31, %v758_v39  ;;  %v1013_v28 = vadd.f32 %v2694_v3, %v992_v23  ;;  %v1014_v8 = vadd.f32 %v2694_v3, %v993_v29  ;;  %v945_v18 = vadd.f32 %v944_v58, %v733_v14  ;;  %2229 = vmatpush3.msra.mxu1 %v1209_v61  ;;  %v1207_v23 = vld [vmem:[#allocation7 + $0xc0] sm:$0xff] }
 0x147   :  { %v976_v4 = vadd.f32 %v950_v12, %v815_v7  ;;  %v756_v63 = vsel %vm3254_vm13, %v749_v17, %v750_v30  ;;  %2204 = vmatmul.mubr.f32.gmra.mxu0 %v2884_v62  ;;  %v3257_v1 = vrot.slane %v2604_v33, 7  ;;  %2148 = vmatmul.mubr.f32.gmra.mxu1 %v2884_v62  ;;  %v817_v57 = vsel %vm2813_vm0, %v769_v60, 0.0  ;;  %v954_v30 = vpop.f32.mrf.mxu0  ;;  %v1205_v60 = vld [vmem:[#allocation7 + $0xb0] sm:$0xff]  ;;  %v1203_v58 = vld [vmem:[#allocation7 + $0xa0] sm:$0xff]  ;;  %vm3259_vm0 = vmmov %vm3254_vm13 }
 0x148   :  { %v994_v2 = vmul.f32 %v2659_v50, %v973_v38  ;;  %v2900_v27 = vmax.f32 %v1013_v28, 0.0  ;;  %v975_v31 = vadd.f32 %v945_v18, %v756_v63  ;;  %2230 = vmatprep.subr.mxu1 %v1208_v48  ;;  %v735_v17 = vsel %vm2819_vm2, %v674_v44, 0.0  ;;  %v1200_v63 = vld [vmem:[#allocation7 + $0x88] sm:$0xff]  ;;  %vm3258_vm2 = vmmov %vm3255_vm11 }
 0x149   :  { %v673_v29 = vsel %vm3255_vm11, %v670_v21, %v3257_v1  ;;  %v997_v33 = vmul.f32 %v2659_v50, %v976_v4  ;;  %2231 = vmatpush3.msra.mxu1 %v1208_v48  ;;  %v2909_v21 = vmax.f32 %v1014_v8, 0.0  ;;  %v1016_v52 = vadd.f32 %v2694_v3, %v995_v36  ;;  %v1204_v36 = vld [vmem:[#allocation7 + $0xa8] sm:$0xff]  ;;  %v1202_v8 = vld [vmem:[#allocation7 + $0x98] sm:$0xff]  ;;  %v1199_v1 = vld [vmem:[#allocation7 + $0x80] sm:$0xff] }
 0x14a   :  { %v960_v22 = vadd.f32 %v2105_v5, %v673_v29  ;;  %2150 = vmatprep.mubr.f32.mxu1 %v2900_v27  ;;  %v1015_v39 = vadd.f32 %v2694_v3, %v994_v2  ;;  %v996_v55 = vmul.f32 %v2659_v50, %v975_v31  ;;  %2232 = vmatprep.subr.mxu1 %v1207_v23  ;;  %vm3260_vm15 = vmmov %vm3258_vm2 }
 0x14b   :  { %2206 = vmatprep.mubr.f32.mxu0 %v2900_v27  ;;  %v955_v14 = vadd.f32 %v954_v30, %v735_v17  ;;  %2233 = vmatpush3.msra.mxu1 %v1207_v23  ;;  %v754_v59 = vsel %vm3254_vm13, %v751_v35, %v752_v56  ;;  %v1032_v49 = vmax.f32 %v1016_v52, 0.0  ;;  %v1018_v54 = vadd.f32 %v2694_v3, %v997_v33 }
 0x14c   :  { %v978_v61 = vadd.f32 %v960_v22, %v817_v57  ;;  %2207 = vmatmul.mubr.f32.gmra.mxu0 %v2909_v21  ;;  %v1031_v38 = vmax.f32 %v1015_v39, 0.0  ;;  %2151 = vmatmul.mubr.f32.gmra.mxu1 %v2909_v21  ;;  %v1017_v12 = vadd.f32 %v2694_v3, %v996_v55 }
 0x14d   :  { %v977_v7 = vadd.f32 %v955_v14, %v754_v59  ;;  %2234 = vmatprep.subr.mxu1 %v1206_v24  ;;  %v1034_v28 = vmax.f32 %v1018_v54, 0.0 }
 0x14e   :  { %v999_v44 = vmul.f32 %v2659_v50, %v978_v61  ;;  %2235 = vmatpush3.msra.mxu1 %v1206_v24  ;;  %2153 = vmatprep.mubr.f32.mxu1 %v1031_v38  ;;  %v1033_v56 = vmax.f32 %v1017_v12, 0.0 }
 0x14f   :  { %v998_v35 = vmul.f32 %v2659_v50, %v977_v7  ;;  %2236 = vmatprep.subr.mxu1 %v1205_v60  ;;  %2209 = vmatprep.mubr.f32.mxu0 %v1031_v38  ;;  %v1201_v50 = vld [vmem:[#allocation7 + $0x90] sm:$0xff] }
 0x150   :  { %2237 = vmatpush3.msra.mxu1 %v1205_v60  ;;  %2210 = vmatmul.mubr.f32.gmra.mxu0 %v1032_v49  ;;  %v1020_v2 = vadd.f32 %v2694_v3, %v999_v44 }
 0x151   :  { %2154 = vmatmul.mubr.f32.gmra.mxu1 %v1032_v49  ;;  %2238 = vmatprep.subr.mxu1 %v1204_v36  ;;  %v1019_v48 = vadd.f32 %v2694_v3, %v998_v35 }
 0x152   :  { %2239 = vmatpush3.msra.mxu1 %v1204_v36  ;;  %2156 = vmatprep.mubr.f32.mxu1 %v1033_v56  ;;  %v1036_v18 = vmax.f32 %v1020_v2, 0.0 }
 0x153   :  { %2240 = vmatprep.subr.mxu1 %v1203_v58  ;;  %2212 = vmatprep.mubr.f32.mxu0 %v1033_v56  ;;  %v1035_v4 = vmax.f32 %v1019_v48, 0.0 }
 0x154   :  { %2241 = vmatpush3.msra.mxu1 %v1203_v58  ;;  %2213 = vmatmul.mubr.f32.gmra.mxu0 %v1034_v28 }
 0x155   :  { %2157 = vmatmul.mubr.f32.gmra.mxu1 %v1034_v28  ;;  %2242 = vmatprep.subr.mxu1 %v1202_v8 }
 0x156   :  { %2243 = vmatpush3.msra.mxu1 %v1202_v8  ;;  %2159 = vmatprep.mubr.f32.mxu1 %v1035_v4 }
 0x157   :  { %2244 = vmatprep.subr.mxu1 %v1201_v50  ;;  %2215 = vmatprep.mubr.f32.mxu0 %v1035_v4 }
 0x158   :  { %2245 = vmatpush3.msra.mxu1 %v1201_v50  ;;  %2216 = vmatmul.mubr.f32.gmra.mxu0 %v1036_v18 }
 0x159   :  { %2160 = vmatmul.mubr.f32.gmra.mxu1 %v1036_v18  ;;  %2246 = vmatprep.subr.mxu1 %v1200_v63 }
 0x15a   :  { %2247 = vmatpush3.msra.mxu1 %v1200_v63  ;;  %2250 = vmatprep.mubr.f32.mxu1 %v2748_v42 }
 0x15b   :  { %2248 = vmatprep.subr.mxu1 %v1199_v1 }
 0x15c   :  { %2249 = vmatpush3.msra.mxu1 %v1199_v1 }
 0x15d   :  { %2251 = vmatmul.mubr.f32.vlgmr.msra.gmra.mxu1 %v2746_v53 }
 0x15e   :  { %2253 = vmatprep.mubr.f32.mxu1 %v2780_v37 }
 0x161   :  { %2254 = vmatmul.mubr.f32.gmra.mxu1 %v2798_v32 }
 0x162   :  { %2256 = vmatprep.mubr.f32.mxu1 %v2831_v43 }
 0x165   :  { %2257 = vmatmul.mubr.f32.gmra.mxu1 %v2842_v20 }
 0x166   :  { %2259 = vmatprep.mubr.f32.mxu1 %v2853_v11 }
 0x169   :  { %2260 = vmatmul.mubr.f32.gmra.mxu1 %v2884_v62 }
 0x16a   :  { %2262 = vmatprep.mubr.f32.mxu1 %v2900_v27 }
 0x16d   :  { %2263 = vmatmul.mubr.f32.gmra.mxu1 %v2909_v21 }
 0x16e   :  { %2265 = vmatprep.mubr.f32.mxu1 %v1031_v38 }
 0x171   :  { %2266 = vmatmul.mubr.f32.gmra.mxu1 %v1032_v49 }
 0x172   :  { %2268 = vmatprep.mubr.f32.mxu1 %v1033_v56 }
 0x175   :  { %2269 = vmatmul.mubr.f32.gmra.mxu1 %v1034_v28 }
 0x176   :  { %2271 = vmatprep.mubr.f32.mxu1 %v1035_v4 }
 0x179   :  { %2272 = vmatmul.mubr.f32.gmra.mxu1 %v1036_v18 }
 0x1f8   :  { %v2140_v3 = vpop.f32.mrf.mxu1  ;;  %v2196_v53 = vpop.f32.mrf.mxu0 }
 0x1f9   :  { %v1378_v60 = vrot.slane %v2140_v3, 7  ;;  %v1426_v38 = vrot.slane %v2196_v53, 1 }
 0x1fa   :  { %v1119_v42 = vpop.f32.mrf.mxu1  ;;  %v2939_v37 = vpop.f32.mrf.mxu0 }
 0x1fb   :  { %v1377_v39 = vrot.slane %v1119_v42, 7  ;;  %v1425_v14 = vrot.slane %v2939_v37, 1 }
 0x1fc   :  { %v2143_v32 = vpop.f32.mrf.mxu1  ;;  %v2199_v43 = vpop.f32.mrf.mxu0 }
 0x1fd   :  { %v1380_v44 = vrot.slane %v2143_v32, 7  ;;  %v1428_v49 = vrot.slane %v2199_v43, 1  ;;  %v1407_v56 = vsel %vm3255_vm11, %v1377_v39, %v1378_v60  ;;  %v1455_v4 = vsel %vm3259_vm0, %v1425_v14, %v1426_v38  ;;  %vm3261_vm11 = vmmov %vm3259_vm0 }
 0x1fe   :  { %v1129_v20 = vpop.f32.mrf.mxu1  ;;  %v1308_v11 = vpop.f32.mrf.mxu0 }
 0x1ff   :  { %v1379_v52 = vrot.slane %v1129_v20, 7  ;;  %v1427_v55 = vrot.slane %v1308_v11, 1 }
 0x201   :  { %v1454_v58 = vsel %vm3254_vm13, %v1426_v38, %v1427_v55  ;;  %v1406_v48 = vsel %vm3258_vm2, %v1378_v60, %v1379_v52  ;;  %v1405_v50 = vsel %vm3260_vm15, %v1379_v52, %v1380_v44  ;;  %v1453_v20 = vsel %vm3259_vm0, %v1427_v55, %v1428_v49  ;;  %vm3262_vm15 = vmmov %vm3258_vm2 }
 0x202   :  { %v1458_v32 = vsel %vm2544_vm1, %v1454_v58, 0.0  ;;  %v1411_v43 = vsel %vm2549_vm3, %v1406_v48, 0.0  ;;  %vm3263_vm13 = vmmov %vm3258_vm2 }
 0x203   :  { %v2146_v62 = vpop.f32.mrf.mxu1  ;;  %v2202_v29 = vpop.f32.mrf.mxu0  ;;  %vm3265_vm1 = vmmov %vm3259_vm0 }
 0x204   :  { %v1382_v28 = vrot.slane %v2146_v62, 7  ;;  %v1430_v8 = vrot.slane %v2202_v29, 1  ;;  %vm3266_vm3 = vmmov %vm3258_vm2 }
 0x205   :  { %v1139_v5 = vpop.f32.mrf.mxu1  ;;  %v1318_v23 = vpop.f32.mrf.mxu0 }
 0x206   :  { %v1381_v7 = vrot.slane %v1139_v5, 7  ;;  %v1429_v12 = vrot.slane %v1318_v23, 1 }
 0x207   :  { %v2941_v27 = vpop.f32.mrf.mxu0  ;;  %v2943_v31 = vpop.f32.mrf.mxu1 }
 0x208   :  { %v1452_v1 = vsel %vm3261_vm11, %v1428_v49, %v1429_v12  ;;  %v2984_v3 = vsel %vm3258_vm2, %v1380_v44, %v1381_v7  ;;  %v1432_v53 = vrot.slane %v2941_v27, 1  ;;  %v1403_v5 = vsel %vm3263_vm13, %v1381_v7, %v1382_v28  ;;  %vm3264_vm11 = vmmov %vm3259_vm0 }
 0x209   :  { %v2945_v57 = vpop.f32.mrf.mxu1  ;;  %v1328_v22 = vpop.f32.mrf.mxu0  ;;  %v1384_v10 = vrot.slane %v2943_v31, 7  ;;  %v1460_v27 = vsel %vm2579_vm5, %v1452_v1, 0.0  ;;  %vm3267_vm5 = vmmov %vm3259_vm0 }
 0x20a   :  { %v1431_v54 = vrot.slane %v1328_v22, 1  ;;  %v1383_v18 = vrot.slane %v2945_v57, 7  ;;  %v1413_v57 = vsel %vm2583_vm6, %v2984_v3, 0.0  ;;  %v3013_v22 = vsel %vm3265_vm1, %v1429_v12, %v1430_v8  ;;  %vm3268_vm6 = vmmov %vm3258_vm2 }
 0x20b   :  { %vm3269_vm2 = vmmov %vm3259_vm0 }
 0x20c   :  { %v2947_v17 = vpop.f32.mrf.mxu1  ;;  %v2951_v30 = vpop.f32.mrf.mxu0  ;;  %v3003_v9 = vsel %vm3264_vm11, %v1430_v8, %v1431_v54  ;;  %v3019_v31 = vsel %vm3266_vm3, %v1382_v28, %v1383_v18  ;;  %v1401_v12 = vsel %vm3268_vm6, %v1383_v18, %v1384_v10  ;;  %vm3276_vm13 = vmmov %vm3266_vm3 }
 0x20d   :  { %v1386_v25 = vrot.slane %v2947_v17, 7  ;;  %vm3277_vm11 = vmmov %vm3259_vm0 }
 0x20e   :  { %v2949_v33 = vpop.f32.mrf.mxu1  ;;  %v1338_v61 = vpop.f32.mrf.mxu0  ;;  %vm3279_vm1 = vmmov %vm3266_vm3 }
 0x20f   :  { %v1433_v11 = vrot.slane %v1338_v61, 1  ;;  %v1385_v52 = vrot.slane %v2949_v33, 7  ;;  %v1462_v33 = vsel %vm2596_vm7, %v3003_v9, 0.0  ;;  %vm3271_vm7 = vmmov %vm3266_vm3 }
 0x210   :  { %v2962_v35 = vpop.f32.mrf.mxu0  ;;  %vm3282_vm6 = vmmov %vm3259_vm0 }
 0x211   :  { %v2953_v21 = vpop.f32.mrf.mxu1  ;;  %v3042_v13 = vsel %vm3269_vm2, %v1432_v53, %v1433_v11  ;;  %v1436_v44 = vrot.slane %v2962_v35, 1  ;;  %v3060_v35 = vsel %vm3271_vm7, %v1384_v10, %v1385_v52  ;;  %vm3284_vm2 = vmmov %vm3279_vm1 }
 0x212   :  { %v1348_v62 = vpop.f32.mrf.mxu0  ;;  %v1388_v18 = vrot.slane %v2953_v21, 7  ;;  %v1464_v51 = vsel %vm2637_vm9, %v3042_v13, 0.0  ;;  %v1417_v15 = vsel %vm2674_vm10, %v3060_v35, 0.0  ;;  %vm3273_vm9 = vmmov %vm3259_vm0  ;;  %v2281_v13 = vld [vmem:[#allocation2] sm:$0xff]  ;;  %vm3275_vm10 = vnez %v3233_v19 }
 0x213   :  { %v2955_v24 = vpop.f32.mrf.mxu1  ;;  %v1435_v49 = vrot.slane %v1348_v62, 1  ;;  %vm3286_vm7 = vmmov %vm3279_vm1 }
 0x214   :  { %v3036_v38 = vpop.f32.mrf.mxu0  ;;  %v1387_v1 = vrot.slane %v2955_v24, 7 }
 0x215   :  { %v2958_v59 = vpop.f32.mrf.mxu1  ;;  %v3081_v10 = vsel %vm3273_vm9, %v1435_v49, %v1436_v44 }
 0x217   :  { %v2960_v36 = vpop.f32.mrf.mxu1 }
 0x219   :  { %v2970_v2 = vpop.f32.mrf.mxu1 }
 0x21a   :  { %v1392_v63 = vrot.slane %v2970_v2, 7 }
 0x21b   :  { %v2987_v42 = vpop.f32.mrf.mxu1 }
 0x21c   :  { %v1408_v29 = vsel %vm3262_vm15, %v1392_v63, %v1377_v39  ;;  %v1434_v39 = vrot.slane %v2951_v30, 1  ;;  %v3034_v30 = vsel %vm3267_vm5, %v1431_v54, %v1432_v53  ;;  %vm3274_vm15 = vmmov %vm3266_vm3 }
 0x21d   :  { %v2252_v23 = vpop.f32.mrf.mxu1  ;;  %v1409_v61 = vsel %vm2557_vm4, %v1408_v29, 0.0  ;;  %vm3270_vm4 = vmmov %vm3259_vm0  ;;  %v1438_v29 = vrot.slane %v3036_v38, 1  ;;  %v3089_v34 = vsel %vm3274_vm15, %v1386_v25, %v1387_v1 }
 0x21e   :  { %v1545_v55 = vadd.f32 %v2252_v23, %v1407_v56  ;;  %v1415_v56 = vsel %vm2600_vm8, %v3019_v31, 0.0  ;;  %v3055_v58 = vsel %vm3270_vm4, %v1433_v11, %v1434_v39  ;;  %vm3272_vm8 = vmmov %vm3266_vm3  ;;  %v1446_v24 = vsel %vm3259_vm0, %v1434_v39, %v1435_v49  ;;  %v2280_v23 = vld [vmem:[#allocation2 + $0x8] sm:$0xff] }
 0x21f   :  { %v1539_v60 = vpop.f32.mrf.mxu1  ;;  %v1399_v53 = vsel %vm3272_vm8, %v1385_v52, %v1386_v25  ;;  %v1390_v31 = vrot.slane %v2958_v59, 7  ;;  %v1397_v25 = vsel %vm3276_vm13, %v1387_v1, %v1388_v18  ;;  %v1419_v1 = vsel %vm2720_vm12, %v3089_v34, 0.0  ;;  %vm3280_vm3 = vmmov %vm3279_vm1 }
 0x220   :  { %v1619_v17 = vadd.f32 %v1545_v55, %v1458_v32  ;;  %v1540_v7 = vadd.f32 %v1539_v60, %v1409_v61  ;;  %v3069_v32 = vpop.f32.mrf.mxu0  ;;  %vm3278_vm12 = vnez %v3237_v6  ;;  %vm3281_vm5 = vmmov %vm3259_vm0  ;;  %vm3287_vm8 = vnez %v3247_v0 }
 0x221   :  { %v2255_v54 = vpop.f32.mrf.mxu1  ;;  %v1437_v61 = vrot.slane %v3069_v32, 1  ;;  %vm3285_vm4 = vmmov %vm3259_vm0  ;;  %vm3288_vm0 = vnez %v3250_v45  ;;  %v2292_v45 = vld [vmem:[#allocation2 + $0x68] sm:$0xff] }
 0x222   :  { %v1640_v48 = vmul.f32 %v3025_v26, %v1619_v17  ;;  %v1618_v28 = vadd.f32 %v1540_v7, %v1455_v4  ;;  %v1555_v8 = vadd.f32 %v2255_v54, %v1405_v50  ;;  %v3091_v17 = vpop.f32.mrf.mxu0  ;;  %vm3289_vm9 = vmmov %vm3285_vm4 }
 0x223   :  { %v1549_v3 = vpop.f32.mrf.mxu1  ;;  %v1444_v19 = vsel %vm3277_vm11, %v1436_v44, %v1437_v61 }
 0x224   :  { %v1661_v4 = vadd.f32 %v3048_v41, %v1640_v48  ;;  %v1639_v50 = vmul.f32 %v3025_v26, %v1618_v28  ;;  %v1621_v11 = vadd.f32 %v1555_v8, %v1460_v27  ;;  %v1550_v62 = vadd.f32 %v1549_v3, %v1411_v43  ;;  %v2282_v3 = vld [vmem:[#allocation2 + $0x18] sm:$0xff] }
 0x225   :  { %v2258_v9 = vpop.f32.mrf.mxu1 }
 0x226   :  { %v1677_v52 = vadd.f32 %v2280_v23, %v1661_v4  ;;  %v1660_v55 = vadd.f32 %v3048_v41, %v1639_v50  ;;  %v1642_v43 = vmul.f32 %v3025_v26, %v1621_v11  ;;  %v1620_v27 = vadd.f32 %v1550_v62, %v1453_v20  ;;  %v2283_v23 = vld [vmem:[#allocation2 + $0x10] sm:$0xff] }
 0x227   :  { %v1565_v39 = vadd.f32 %v2258_v9, %v1403_v5  ;;  %v1559_v60 = vpop.f32.mrf.mxu1  ;;  %v1466_v5 = vsel %vm3275_vm10, %v1446_v24, 0.0  ;;  %v3111_v9 = vpop.f32.mrf.mxu0 }
 0x228   :  { %v1693_v7 = vmax.f32 %v1677_v52, 0.0  ;;  %v1676_v49 = vadd.f32 %v2281_v13, %v1660_v55  ;;  %v1663_v54 = vadd.f32 %v3048_v41, %v1642_v43  ;;  %v1641_v48 = vmul.f32 %v3025_v26, %v1620_v27 }
 0x229   :  { %v1623_v20 = vadd.f32 %v1565_v39, %v1462_v33  ;;  %v1560_v28 = vadd.f32 %v1559_v60, %v1413_v57  ;;  %v2261_v8 = vpop.f32.mrf.mxu1  ;;  %v1440_v43 = vrot.slane %v3091_v17, 1  ;;  %v1439_v13 = vrot.slane %v3111_v9, 1  ;;  %v2294_v9 = vld [vmem:[#allocation2 + $0x78] sm:$0xff] }
 0x22a   :  { %1709 = vst [vmem:[#allocation8 + $0x8] sm:$0xff] %v1693_v7  ;;  %v1692_v35 = vmax.f32 %v1676_v49, 0.0  ;;  %v1679_v4 = vadd.f32 %v2282_v3, %v1663_v54  ;;  %v1662_v50 = vadd.f32 %v3048_v41, %v1641_v48  ;;  %v1575_v11 = vadd.f32 %v2261_v8, %v1401_v12 }
 0x22b   :  { %v1644_v62 = vmul.f32 %v3025_v26, %v1623_v20  ;;  %v1622_v57 = vadd.f32 %v1560_v28, %v3013_v22  ;;  %v1569_v33 = vpop.f32.mrf.mxu1  ;;  %v1389_v22 = vrot.slane %v2960_v36, 7  ;;  %v1468_v54 = vsel %vm3278_vm12, %v1444_v19, 0.0 }
 0x22c   :  { %1708 = vst [vmem:[#allocation8] sm:$0xff] %v1692_v35  ;;  %v1695_v24 = vmax.f32 %v1679_v4, 0.0  ;;  %v1678_v12 = vadd.f32 %v2283_v23, %v1662_v50  ;;  %v1625_v52 = vadd.f32 %v1575_v11, %v1464_v51  ;;  %v1570_v55 = vadd.f32 %v1569_v33, %v1415_v56  ;;  %v2284_v51 = vld [vmem:[#allocation2 + $0x28] sm:$0xff]  ;;  %v2286_v50 = vld [vmem:[#allocation2 + $0x38] sm:$0xff]  ;;  %v2287_v23 = vld [vmem:[#allocation2 + $0x30] sm:$0xff] }
 0x22d   :  { %v1665_v27 = vadd.f32 %v3048_v41, %v1644_v62  ;;  %v1643_v44 = vmul.f32 %v3025_v26, %v1622_v57  ;;  %v2264_v39 = vpop.f32.mrf.mxu1  ;;  %v1395_v4 = vsel %vm3279_vm1, %v1389_v22, %v1390_v31  ;;  %v1396_v6 = vsel %vm3280_vm3, %v1388_v18, %v1389_v22 }
 0x22e   :  { %1711 = vst [vmem:[#allocation8 + $0x18] sm:$0xff] %v1695_v24  ;;  %v1694_v47 = vmax.f32 %v1678_v12, 0.0  ;;  %v1646_v60 = vmul.f32 %v3025_v26, %v1625_v52  ;;  %v1624_v34 = vadd.f32 %v1570_v55, %v3034_v30  ;;  %v1585_v7 = vadd.f32 %v2264_v39, %v1399_v53  ;;  %v2285_v30 = vld [vmem:[#allocation2 + $0x20] sm:$0xff]  ;;  %v2288_v39 = vld [vmem:[#allocation2 + $0x48] sm:$0xff] }
 0x22f   :  { %v1681_v56 = vadd.f32 %v2284_v51, %v1665_v27  ;;  %v1664_v36 = vadd.f32 %v3048_v41, %v1643_v44  ;;  %v1579_v49 = vpop.f32.mrf.mxu1  ;;  %v1391_v57 = vrot.slane %v2987_v42, 7  ;;  %v1442_v21 = vsel %vm3281_vm5, %v1438_v29, %v1439_v13 }
 0x230   :  { %1710 = vst [vmem:[#allocation8 + $0x10] sm:$0xff] %v1694_v47  ;;  %v1667_v48 = vadd.f32 %v3048_v41, %v1646_v60  ;;  %v1645_v20 = vmul.f32 %v3025_v26, %v1624_v34  ;;  %v1627_v28 = vadd.f32 %v1585_v7, %v1466_v5  ;;  %v1580_v8 = vadd.f32 %v1579_v49, %v1417_v15 }
 0x231   :  { %v1697_v35 = vmax.f32 %v1681_v56, 0.0  ;;  %v1680_v53 = vadd.f32 %v2285_v30, %v1664_v36  ;;  %v2267_v3 = vpop.f32.mrf.mxu1  ;;  %v1421_v27 = vsel %vm2760_vm14, %v1396_v6, 0.0  ;;  %vm3283_vm14 = vnez %v3242_v16  ;;  %v2289_v56 = vld [vmem:[#allocation2 + $0x40] sm:$0xff]  ;;  %v2290_v30 = vld [vmem:[#allocation2 + $0x58] sm:$0xff] }
 0x232   :  { %v1683_v11 = vadd.f32 %v2286_v50, %v1667_v48  ;;  %v1666_v62 = vadd.f32 %v3048_v41, %v1645_v20  ;;  %v1648_v15 = vmul.f32 %v3025_v26, %v1627_v28  ;;  %v1626_v5 = vadd.f32 %v1580_v8, %v3055_v58  ;;  %v2291_v50 = vld [vmem:[#allocation2 + $0x50] sm:$0xff] }
 0x233   :  { %1713 = vst [vmem:[#allocation8 + $0x28] sm:$0xff] %v1697_v35  ;;  %v1696_v33 = vmax.f32 %v1680_v53, 0.0  ;;  %v1595_v18 = vadd.f32 %v2267_v3, %v1397_v25  ;;  %v1589_v19 = vpop.f32.mrf.mxu1  ;;  %v1456_v25 = vsel %vm3282_vm6, %v1440_v43, %v1425_v14  ;;  %v1470_v40 = vsel %vm3283_vm14, %v1442_v21, 0.0 }
 0x234   :  { %v1699_v24 = vmax.f32 %v1683_v11, 0.0  ;;  %v1682_v12 = vadd.f32 %v2287_v23, %v1666_v62  ;;  %v1669_v52 = vadd.f32 %v3048_v41, %v1648_v15  ;;  %v1647_v58 = vmul.f32 %v3025_v26, %v1626_v5 }
 0x235   :  { %1712 = vst [vmem:[#allocation8 + $0x20] sm:$0xff] %v1696_v33  ;;  %v1629_v42 = vadd.f32 %v1595_v18, %v1468_v54  ;;  %v1590_v55 = vadd.f32 %v1589_v19, %v1419_v1  ;;  %v2270_v22 = vpop.f32.mrf.mxu1  ;;  %v1394_v14 = vsel %vm3284_vm2, %v1390_v31, %v1391_v57  ;;  %v1443_v16 = vsel %vm3285_vm4, %v1437_v61, %v1438_v29  ;;  %v2293_v18 = vld [vmem:[#allocation2 + $0x60] sm:$0xff] }
 0x236   :  { %1715 = vst [vmem:[#allocation8 + $0x38] sm:$0xff] %v1699_v24  ;;  %v1698_v44 = vmax.f32 %v1682_v12, 0.0  ;;  %v1685_v47 = vadd.f32 %v2288_v39, %v1669_v52  ;;  %v1668_v60 = vadd.f32 %v3048_v41, %v1647_v58  ;;  %v1605_v34 = vadd.f32 %v2270_v22, %v1395_v4  ;;  %v2295_v12 = vld [vmem:[#allocation2 + $0x70] sm:$0xff] }
 0x237   :  { %v1650_v1 = vmul.f32 %v3025_v26, %v1629_v42  ;;  %v1628_v7 = vadd.f32 %v1590_v55, %v3081_v10  ;;  %v1599_v37 = vpop.f32.mrf.mxu1  ;;  %v1393_v59 = vsel %vm3286_vm7, %v1391_v57, %v1392_v63  ;;  %v1472_v32 = vsel %vm3287_vm8, %v1456_v25, 0.0 }
 0x238   :  { %1714 = vst [vmem:[#allocation8 + $0x30] sm:$0xff] %v1698_v44  ;;  %v1701_v51 = vmax.f32 %v1685_v47, 0.0  ;;  %v1684_v36 = vadd.f32 %v2289_v56, %v1668_v60  ;;  %v1631_v49 = vadd.f32 %v1605_v34, %v1470_v40  ;;  %v1600_v54 = vadd.f32 %v1599_v37, %v1421_v27 }
 0x239   :  { %v1671_v48 = vadd.f32 %v3048_v41, %v1650_v1  ;;  %v1649_v20 = vmul.f32 %v3025_v26, %v1628_v7  ;;  %v2273_v10 = vpop.f32.mrf.mxu1  ;;  %v1423_v2 = vsel %vm3288_vm0, %v1394_v14, 0.0  ;;  %v1441_v0 = vsel %vm3289_vm9, %v1439_v13, %v1440_v43 }
 0x23a   :  { %1717 = vst [vmem:[#allocation8 + $0x48] sm:$0xff] %v1701_v51  ;;  %v1700_v31 = vmax.f32 %v1684_v36, 0.0  ;;  %v1652_v28 = vmul.f32 %v3025_v26, %v1631_v49  ;;  %v1630_v8 = vadd.f32 %v1600_v54, %v1443_v16  ;;  %v1615_v35 = vadd.f32 %v2273_v10, %v1393_v59 }
 0x23b   :  { %v1687_v53 = vadd.f32 %v2290_v30, %v1671_v48  ;;  %v1670_v38 = vadd.f32 %v3048_v41, %v1649_v20  ;;  %v1609_v29 = vpop.f32.mrf.mxu1 }
 0x23c   :  { %1716 = vst [vmem:[#allocation8 + $0x40] sm:$0xff] %v1700_v31  ;;  %v1673_v63 = vadd.f32 %v3048_v41, %v1652_v28  ;;  %v1651_v61 = vmul.f32 %v3025_v26, %v1630_v8  ;;  %v1633_v3 = vadd.f32 %v1615_v35, %v1472_v32  ;;  %v1610_v4 = vadd.f32 %v1609_v29, %v1423_v2 }
 0x23d   :  { %v1703_v6 = vmax.f32 %v1687_v53, 0.0  ;;  %v1686_v11 = vadd.f32 %v2291_v50, %v1670_v38 }
 0x23e   :  { %v1689_v62 = vadd.f32 %v2292_v45, %v1673_v63  ;;  %v1672_v15 = vadd.f32 %v3048_v41, %v1651_v61  ;;  %v1654_v5 = vmul.f32 %v3025_v26, %v1633_v3  ;;  %v1632_v57 = vadd.f32 %v1610_v4, %v1441_v0 }
 0x23f   :  { %1719 = vst [vmem:[#allocation8 + $0x58] sm:$0xff] %v1703_v6  ;;  %v1702_v21 = vmax.f32 %v1686_v11, 0.0 }
 0x240   :  { %v1705_v33 = vmax.f32 %v1689_v62, 0.0  ;;  %v1688_v19 = vadd.f32 %v2293_v18, %v1672_v15  ;;  %v1675_v24 = vadd.f32 %v3048_v41, %v1654_v5  ;;  %v1653_v17 = vmul.f32 %v3025_v26, %v1632_v57 }
 0x241   :  { %1718 = vst [vmem:[#allocation8 + $0x50] sm:$0xff] %v1702_v21 }
 0x242   :  { %1721 = vst [vmem:[#allocation8 + $0x68] sm:$0xff] %v1705_v33  ;;  %v1704_v46 = vmax.f32 %v1688_v19, 0.0  ;;  %v1691_v43 = vadd.f32 %v2294_v9, %v1675_v24  ;;  %v1674_v13 = vadd.f32 %v3048_v41, %v1653_v17 }
 0x244   :  { %1720 = vst [vmem:[#allocation8 + $0x60] sm:$0xff] %v1704_v46  ;;  %v1707_v23 = vmax.f32 %v1691_v43, 0.0  ;;  %v1690_v52 = vadd.f32 %v2295_v12, %v1674_v13 }
 0x246   :  { %1723 = vst [vmem:[#allocation8 + $0x78] sm:$0xff] %v1707_v23  ;;  %v1706_v58 = vmax.f32 %v1690_v52, 0.0 }
 0x248   :  { %1722 = vst [vmem:[#allocation8 + $0x70] sm:$0xff] %v1706_v58 }
 0x249   :  { %2367 = shalt.err (!%p2364_p5)
}
 0x24a   :  { %1735 = dma.vmem_to_hbm [thread:$0]  %s1730_s11, 2048, %s3203_s4, [#allocation4], %s2384_s20, %s2384_s20, %s2385_s21  }
 0x24b   :  { %2380 = dma.done.wait [#allocation4], 2048  }
 0x24c   :  { %2381 = vsyncadd [#allocation4], 4294965248 }
 0x24d   :  { %1739 = vsyncpa [#allocation3], 1 }
 0x24e   :  { %1740 = vsyncpa [#allocation6], 1 }
 0x24f   :  { %1741 = vsyncpa [#allocation4], 1 }

</bundles_post_ra>
